<compile_context>
chip_gen: v7x
topology: tpu7x:2x2x1
jax: 0.10.0
libtpu: 0.0.40
codegen_flags: <defaults>
</compile_context>

<pallas_src>
import functools

import jax
import jax.numpy as jnp
import numpy as np
from jax import lax
from jax.experimental import pallas as pl
from jax.experimental.pallas import tpu as pltpu


# ----------------------------------------------------------------------------------
# fused conv (general K/stride/dilation/padding) + folded-BN kernel, grid over batch
# ----------------------------------------------------------------------------------
def _basic_conv2d_kernel(x_ref, w_ref, bias_ref, out_ref, *scratch,
                         K, stride, dilation, padding, H, W, Ho, Wo):
    # x_ref:    (1, H, W, Cin)       un-padded NHWC input (one batch element)
    # w_ref:    (Cout, K*K*Cin)      bf16, BN scale already folded in, tap order (dy, dx, cin)
    # bias_ref: (Cout, 1)            folded BN bias = beta - running_mean * scale
    # out_ref:  (1, Cout, Ho*Wo)     lane-dense (Ho*Wo on lanes) output slab, per-batch NCHW
    # scratch:  ((Hp, Wp, Cin),)     zero-padding buffer, only present when padding > 0
    Cin = x_ref.shape[3]

    if padding > 0:
        xp = scratch[0]
        xp[...] = jnp.zeros_like(xp)                           # cheap; keeps "parallel" grid safe
        xp[padding:padding + H, padding:padding + W, :] = x_ref[0]
        xv = xp[...]                                           # (Hp, Wp, Cin)
    else:
        xv = x_ref[0]                                          # (H, W, Cin)

    # Transposed im2col: each tap contributes a (Cin, Ho*Wo) block; concatenation is along
    # sublanes (Cin=32 rows, multiple of 8) -> no lane shuffles.  One XLU transpose per tap.
    cols = []
    for dy in range(K):
        for dx in range(K):
            y0, x0 = dy * dilation, dx * dilation
            if stride == 1:
                patch = xv[y0:y0 + Ho, x0:x0 + Wo, :]          # (Ho, Wo, Cin)
            else:
                # TODO(synk): strided slicing is correctness-only; validate perf before relying on it.
                patch = xv[y0:y0 + (Ho - 1) * stride + 1:stride,
                           x0:x0 + (Wo - 1) * stride + 1:stride, :]
            cols.append(patch.reshape(Ho * Wo, Cin).T)         # (Cin, Ho*Wo)
    patches_t = jnp.concatenate(cols, axis=0).astype(jnp.bfloat16)   # (K*K*Cin, Ho*Wo)

    # (Cout, K*K*Cin) @ (K*K*Cin, Ho*Wo) -> (Cout, Ho*Wo): full MXU contraction depth,
    # lane-dense (256-wide) result.  bf16 operands, f32 accumulator, DEFAULT precision.
    acc = jnp.dot(w_ref[...], patches_t, preferred_element_type=jnp.float32)

    # folded BatchNorm bias (scale already folded into w); forward() applies no ReLU.
    out_ref[0] = (acc + bias_ref[...]).astype(out_ref.dtype)


def basic_conv2d(x, w, gamma, beta, running_mean, running_var, *,
                 stride=1, padding=0, dilation=1, eps=1e-5):
    """x: (N, H, W, Cin) NHWC.  w: (K, K, Cin, Cout).  Returns (N, Cout, Ho, Wo) (NCHW)."""
    N, H, W, Cin = x.shape
    K = w.shape[0]
    Cout = w.shape[3]
    Ho = (H + 2 * padding - dilation * (K - 1) - 1) // stride + 1
    Wo = (W + 2 * padding - dilation * (K - 1) - 1) // stride + 1
    Hp, Wp = H + 2 * padding, W + 2 * padding

    # One-time glue in the wrapper: BN folding into the weights + layout of the weight matrix.
    scale = (gamma / jnp.sqrt(running_var + eps)).astype(jnp.float32)          # (Cout,)
    bias = (beta - running_mean * scale).reshape(Cout, 1).astype(jnp.float32)  # (Cout, 1)
    # (K, K, Cin, Cout) * scale  ->  (Cout, K*K*Cin), tap-major (dy, dx, cin) to match the kernel.
    w_t = (w.astype(jnp.float32) * scale[None, None, None, :]
           ).transpose(3, 0, 1, 2).reshape(Cout, K * K * Cin).astype(jnp.bfloat16)

    scratch_shapes = [pltpu.VMEM((Hp, Wp, Cin), x.dtype)] if padding > 0 else []

    # TODO(synk): for large H/W/C add a grid axis over Ho row-blocks with a (K-1)*dilation halo
    # and size vmem_limit_bytes explicitly (v7x has only 64 MiB VMEM); on single-TC v5e/v6e the
    # batch can additionally be merged into the matmul M dimension to avoid the per-step overhead.
    out_flat = pl.pallas_call(
        functools.partial(_basic_conv2d_kernel, K=K, stride=stride, dilation=dilation,
                          padding=padding, H=H, W=W, Ho=Ho, Wo=Wo),
        grid=(N,),
        in_specs=[
            pl.BlockSpec((1, H, W, Cin), lambda n: (n, 0, 0, 0)),
            pl.BlockSpec((Cout, K * K * Cin), lambda n: (0, 0)),
            pl.BlockSpec((Cout, 1), lambda n: (0, 0)),
        ],
        out_specs=pl.BlockSpec((1, Cout, Ho * Wo), lambda n: (n, 0, 0)),
        out_shape=jax.ShapeDtypeStruct((N, Cout, Ho * Wo), jnp.float32),
        scratch_shapes=scratch_shapes,
        compiler_params=pltpu.CompilerParams(
            dimension_semantics=("parallel",),
        ),
    )(x, w_t, bias)

    return out_flat.reshape(N, Cout, Ho, Wo)   # NCHW, same layout as the PyTorch module


# ----------------------------------------------------------------------------------
# plain-JAX reference (mirrors the PyTorch forward: bn(conv(x)), eval-mode BN), f32
# ----------------------------------------------------------------------------------
def reference_forward(x, w, gamma, beta, running_mean, running_var, *,
                      stride=1, padding=0, dilation=1, eps=1e-5):
    conv = lax.conv_general_dilated(
        x, w,
        window_strides=(stride, stride),
        padding=[(padding, padding), (padding, padding)],
        rhs_dilation=(dilation, dilation),
        dimension_numbers=('NHWC', 'HWIO', 'NCHW'),
        precision=lax.Precision.HIGHEST)
    scale = gamma / jnp.sqrt(running_var + eps)
    bias = beta - running_mean * scale
    return conv * scale[None, :, None, None] + bias[None, :, None, None]


# ----------------------------------------------------------------------------------
if __name__ == "__main__":
    # PyTorch-equivalent config: BasicConv2d(32, 32, kernel_size=3, padding=1),
    # x of shape [2, 32, 16, 16] (NCHW)  ->  here NHWC input (2, 16, 16, 32), NCHW output.
    N, H, W = 2, 16, 16
    Cin, Cout, K = 32, 32, 3
    stride, padding, dilation = 1, 1, 1

    key = jax.random.PRNGKey(0)
    kx, kw, kg, kb, km, kv = jax.random.split(key, 6)
    x = jax.random.normal(kx, (N, H, W, Cin), jnp.float32)
    w = (jax.random.normal(kw, (K, K, Cin, Cout), jnp.float32)
         / np.sqrt(K * K * Cin)).astype(jnp.float32)
    gamma = 1.0 + 0.1 * jax.random.normal(kg, (Cout,), jnp.float32)
    beta = 0.1 * jax.random.normal(kb, (Cout,), jnp.float32)
    running_mean = 0.1 * jax.random.normal(km, (Cout,), jnp.float32)
    running_var = jax.random.uniform(kv, (Cout,), jnp.float32, minval=0.5, maxval=1.5)

    out = basic_conv2d(x, w, gamma, beta, running_mean, running_var,
                       stride=stride, padding=padding, dilation=dilation)
    out = jax.block_until_ready(out)

    ref = reference_forward(x, w, gamma, beta, running_mean, running_var,
                            stride=stride, padding=padding, dilation=dilation)
    # bf16 MXU operands vs f32 reference -> relaxed tolerance (per perf review).
    np.testing.assert_allclose(np.asarray(out), np.asarray(ref), rtol=2e-2, atol=3e-2)
    print("KERNEL_OK")
</pallas_src>

<mosaic_0001>
module attributes {stable_mosaic.version = 11 : i64} {
  func.func @_basic_conv2d_kernel(%arg0: i32, %arg1: memref<1x16x16x32xf32, #tpu.memory_space<vmem>>, %arg2: memref<32x288xbf16, #tpu.memory_space<vmem>>, %arg3: memref<32x1xf32, #tpu.memory_space<vmem>>, %arg4: memref<1x32x256xf32, #tpu.memory_space<vmem>>, %arg5: memref<18x18x32xf32, #tpu.memory_space<vmem>>) attributes {dimension_semantics = [#tpu.dimension_semantics<parallel>], iteration_bounds = array<i64: 2>, scalar_prefetch = 0 : i64, scratch_operands = 1 : i64, tpu.core_type = #tpu.core_type<tc>, window_params = [{transform_indices = @transform_0, window_bounds = array<i64: 1, 16, 16, 32>}, {pipeline_mode = #tpu.pipeline_mode<synchronous>, transform_indices = @transform_1, window_bounds = array<i64: 32, 288>}, {pipeline_mode = #tpu.pipeline_mode<synchronous>, transform_indices = @transform_2, window_bounds = array<i64: 32, 1>}, {transform_indices = @transform_3, window_bounds = array<i64: 1, 32, 256>}]} {
    %cst = arith.constant 0.000000e+00 : f32
    %0 = vector.broadcast %cst : f32 to vector<18x18x32xf32>
    %c0 = arith.constant 0 : index
    %c0_0 = arith.constant 0 : index
    %c0_1 = arith.constant 0 : index
    %1 = vector.load %arg5[%c0, %c0_0, %c0_1] : memref<18x18x32xf32, #tpu.memory_space<vmem>>, vector<18x18x32xf32>
    tpu.vector_store %arg5[%c0, %c0_0, %c0_1], %0 {strides = array<i32>} : memref<18x18x32xf32, #tpu.memory_space<vmem>>, vector<18x18x32xf32>,
    %c0_2 = arith.constant 0 : index
    %c0_3 = arith.constant 0 : index
    %c0_4 = arith.constant 0 : index
    %c0_5 = arith.constant 0 : index
    %2 = vector.load %arg1[%c0_2, %c0_3, %c0_4, %c0_5] : memref<1x16x16x32xf32, #tpu.memory_space<vmem>>, vector<1x16x16x32xf32>
    %3 = vector.shape_cast %2 : vector<1x16x16x32xf32> to vector<16x16x32xf32>
    %c1 = arith.constant 1 : index
    %c1_6 = arith.constant 1 : index
    %c0_7 = arith.constant 0 : index
    %4 = vector.load %arg5[%c1, %c1_6, %c0_7] : memref<18x18x32xf32, #tpu.memory_space<vmem>>, vector<16x16x32xf32>
    tpu.vector_store %arg5[%c1, %c1_6, %c0_7], %3 {strides = array<i32>} : memref<18x18x32xf32, #tpu.memory_space<vmem>>, vector<16x16x32xf32>,
    %c0_8 = arith.constant 0 : index
    %c0_9 = arith.constant 0 : index
    %c0_10 = arith.constant 0 : index
    %5 = vector.load %arg5[%c0_8, %c0_9, %c0_10] : memref<18x18x32xf32, #tpu.memory_space<vmem>>, vector<18x18x32xf32>
    %6 = vector.extract_strided_slice %5 {offsets = [0, 0, 0], sizes = [16, 16, 32], strides = [1, 1, 1]} : vector<18x18x32xf32> to vector<16x16x32xf32>
    %7 = vector.shape_cast %6 : vector<16x16x32xf32> to vector<256x32xf32>
    %8 = tpu.transpose %7, [1, 0] : vector<256x32xf32> -> vector<32x256xf32>
    %9 = vector.extract_strided_slice %5 {offsets = [0, 1, 0], sizes = [16, 16, 32], strides = [1, 1, 1]} : vector<18x18x32xf32> to vector<16x16x32xf32>
    %10 = vector.shape_cast %9 : vector<16x16x32xf32> to vector<256x32xf32>
    %11 = tpu.transpose %10, [1, 0] : vector<256x32xf32> -> vector<32x256xf32>
    %12 = vector.extract_strided_slice %5 {offsets = [0, 2, 0], sizes = [16, 16, 32], strides = [1, 1, 1]} : vector<18x18x32xf32> to vector<16x16x32xf32>
    %13 = vector.shape_cast %12 : vector<16x16x32xf32> to vector<256x32xf32>
    %14 = tpu.transpose %13, [1, 0] : vector<256x32xf32> -> vector<32x256xf32>
    %15 = vector.extract_strided_slice %5 {offsets = [1, 0, 0], sizes = [16, 16, 32], strides = [1, 1, 1]} : vector<18x18x32xf32> to vector<16x16x32xf32>
    %16 = vector.shape_cast %15 : vector<16x16x32xf32> to vector<256x32xf32>
    %17 = tpu.transpose %16, [1, 0] : vector<256x32xf32> -> vector<32x256xf32>
    %18 = vector.extract_strided_slice %5 {offsets = [1, 1, 0], sizes = [16, 16, 32], strides = [1, 1, 1]} : vector<18x18x32xf32> to vector<16x16x32xf32>
    %19 = vector.shape_cast %18 : vector<16x16x32xf32> to vector<256x32xf32>
    %20 = tpu.transpose %19, [1, 0] : vector<256x32xf32> -> vector<32x256xf32>
    %21 = vector.extract_strided_slice %5 {offsets = [1, 2, 0], sizes = [16, 16, 32], strides = [1, 1, 1]} : vector<18x18x32xf32> to vector<16x16x32xf32>
    %22 = vector.shape_cast %21 : vector<16x16x32xf32> to vector<256x32xf32>
    %23 = tpu.transpose %22, [1, 0] : vector<256x32xf32> -> vector<32x256xf32>
    %24 = vector.extract_strided_slice %5 {offsets = [2, 0, 0], sizes = [16, 16, 32], strides = [1, 1, 1]} : vector<18x18x32xf32> to vector<16x16x32xf32>
    %25 = vector.shape_cast %24 : vector<16x16x32xf32> to vector<256x32xf32>
    %26 = tpu.transpose %25, [1, 0] : vector<256x32xf32> -> vector<32x256xf32>
    %27 = vector.extract_strided_slice %5 {offsets = [2, 1, 0], sizes = [16, 16, 32], strides = [1, 1, 1]} : vector<18x18x32xf32> to vector<16x16x32xf32>
    %28 = vector.shape_cast %27 : vector<16x16x32xf32> to vector<256x32xf32>
    %29 = tpu.transpose %28, [1, 0] : vector<256x32xf32> -> vector<32x256xf32>
    %30 = vector.extract_strided_slice %5 {offsets = [2, 2, 0], sizes = [16, 16, 32], strides = [1, 1, 1]} : vector<18x18x32xf32> to vector<16x16x32xf32>
    %31 = vector.shape_cast %30 : vector<16x16x32xf32> to vector<256x32xf32>
    %32 = tpu.transpose %31, [1, 0] : vector<256x32xf32> -> vector<32x256xf32>
    %33 = tpu.concatenate %8, %11, %14, %17, %20, %23, %26, %29, %32 in 0 : vector<32x256xf32>, vector<32x256xf32>, vector<32x256xf32>, vector<32x256xf32>, vector<32x256xf32>, vector<32x256xf32>, vector<32x256xf32>, vector<32x256xf32>, vector<32x256xf32> -> vector<288x256xf32>
    %34 = arith.truncf %33 : vector<288x256xf32> to vector<288x256xbf16>
    %c0_11 = arith.constant 0 : index
    %c0_12 = arith.constant 0 : index
    %35 = vector.load %arg2[%c0_11, %c0_12] : memref<32x288xbf16, #tpu.memory_space<vmem>>, vector<32x288xbf16>
    %cst_13 = arith.constant dense<0.000000e+00> : vector<32x256xf32>
    %36 = tpu.matmul %35, %34, %cst_13 {dimension_numbers = #tpu.dot_dimension_numbers<[1], [0], [0], [1], [0, 0, 1, 1], [], []>} : vector<32x288xbf16>, vector<288x256xbf16>, vector<32x256xf32> -> vector<32x256xf32>
    %c0_14 = arith.constant 0 : index
    %c0_15 = arith.constant 0 : index
    %37 = vector.load %arg3[%c0_14, %c0_15] : memref<32x1xf32, #tpu.memory_space<vmem>>, vector<32x1xf32>
    %38 = vector.broadcast %37 : vector<32x1xf32> to vector<32x256xf32>
    %39 = arith.addf %36, %38 : vector<32x256xf32>
    %c0_16 = arith.constant 0 : index
    %c0_17 = arith.constant 0 : index
    %c0_18 = arith.constant 0 : index
    %40 = vector.load %arg4[%c0_16, %c0_17, %c0_18] : memref<1x32x256xf32, #tpu.memory_space<vmem>>, vector<1x32x256xf32>
    %41 = vector.shape_cast %40 : vector<1x32x256xf32> to vector<32x256xf32>
    %42 = vector.shape_cast %39 : vector<32x256xf32> to vector<1x32x256xf32>
    tpu.vector_store %arg4[%c0_16, %c0_17, %c0_18], %42 {strides = array<i32>} : memref<1x32x256xf32, #tpu.memory_space<vmem>>, vector<1x32x256xf32>,
    return
  }
  func.func @transform_0(%arg0: i32) -> (i32, i32, i32, i32) {
    %c0_i32 = arith.constant 0 : i32
    %c0_i32_0 = arith.constant 0 : i32
    %c0_i32_1 = arith.constant 0 : i32
    %c0_i32_2 = arith.constant 0 : i32
    return %arg0, %c0_i32, %c0_i32_0, %c0_i32_1 : i32, i32, i32, i32
  }
  func.func @transform_1(%arg0: i32) -> (i32, i32) {
    %c0_i32 = arith.constant 0 : i32
    %c0_i32_0 = arith.constant 0 : i32
    %c0_i32_1 = arith.constant 0 : i32
    return %c0_i32, %c0_i32_0 : i32, i32
  }
  func.func @transform_2(%arg0: i32) -> (i32, i32) {
    %c0_i32 = arith.constant 0 : i32
    %c0_i32_0 = arith.constant 0 : i32
    %c0_i32_1 = arith.constant 0 : i32
    return %c0_i32, %c0_i32_0 : i32, i32
  }
  func.func @transform_3(%arg0: i32) -> (i32, i32, i32) {
    %c0_i32 = arith.constant 0 : i32
    %c0_i32_0 = arith.constant 0 : i32
    %c0_i32_1 = arith.constant 0 : i32
    return %arg0, %c0_i32, %c0_i32_0 : i32, i32, i32
  }
}

</mosaic_0001>

<bundles_post_ra>
// kernel: tpu_custom_call.1
= control target key start
LH: loop header
LB: loop body
LE: loop exit
PB: predicated region body
PF: predicated region fallthrough
CT: control target
= control target key end

     0   :  { %8 = vsyncpa [#allocation4], 0  ;;  %s3427_s0 = inlined_call_operand.hbm [shape: f32[2,16,16,32], index: 0, kind: input, shape index: {}]   ;;  %s3428_s1 = inlined_call_operand.hbm [shape: bf16[32,288], index: 1, kind: input, shape index: {}]   ;;  %s3429_s2 = inlined_call_operand.vmem [shape: f32[32,1], index: 2, kind: input, shape index: {}]   ;;  %s3430_s3 = inlined_call_operand.hbm [shape: f32[2,32,256], index: 3, kind: output, shape index: {}]  }
   0x1   :  { %10 = vsyncpa [#allocation4 + $0x1], 0 }
   0x2   :  { %11 = vsyncpa [#allocation7], 0 }
   0x3   :  { %12 = vsyncpa [#allocation5], 0 }
   0x4   :  { %14 = vsyncpa [#allocation5 + $0x1], 0  ;;  %s2329_s12 = smov 0   ;;  %s2331_s13 = smov 0  }
   0x5   :  { %s2333_s14 = smov 0   ;;  %s2335_s15 = smov 0  }
   0x6 LB: > { %s2350_s16 = sadd.s32 4294967295, %s2296_s15   ;;  %s1579_s17 = sadd.s32 4294967294, %s2296_s15   ;;  %s2296_s15 = sphi %s2335_s15, %s3626_s15   ;;  %s2292_s14 = sphi %s2333_s14, %s3625_s14   ;;  %s2288_s13 = sphi %s2331_s13, %s3624_s13   ;;  %s2284_s12 = sphi %s2329_s12, %s3623_s12  }
   0x7   : > { %p40_p0 = scmp.ne.s32.totalorder %s2288_s13, %s2284_s12  ;;  %p3431_p1 = scmp.eq.s32.totalorder %s2350_s16, 0 }
   0x8   : > { %p112_p3 = scmp.eq.s32.totalorder %s1579_s17, 1  ;;  %p1580_p5 = scmp.ge.s32.totalorder %s2296_s15, 1 }
   0x9   : > { %p2359_p4 = por %p3431_p1, %p40_p0  ;;  %p119_p7 = scmp.lt.s32.totalorder %s2296_s15, 3 }
   0xa   : > { %p2364_p6 = por %p112_p3, %p40_p0  ;;  %s2298_s21 = smov [#allocation6]  }
   0xb   : > { %s3495_s18 = scalar_select %p2359_p4, 1, 0 }
   0xc   : > { %s3496_s19 = scalar_select %p2364_p6, 1, 0 }
   0xd   : > { %p2369_p8 = pnand %p1580_p5, %p119_p7  ;;  %s131_s22 = sshll.u32 %s2298_s21, 4  ;;  %s2373_s22 = int_to_ptr.vmem [resolvable:$true] %s131_s22 }
   0xe   : > { %s2385_s24 = sadd.s32 1, %s2296_s15   ;;  %s27_s25 = sadd.s32 1, %s2292_s14 }
   0xf   : > { %s3497_s20 = scalar_select %p2369_p8, 1, 0 }
  0x10   : > { %p1629_p9 = pneg %p2369_p8  ;;  %s24_s26 = ssub.s32 %s2296_s15, %s2385_s24 }
  0x11   : > { %s2168_s29 = scalar_lea.hbm %s3428_s1, 768 }
  0x12   : > { %p2380_p11 = pnand %p1629_p9, %p3431_p1  ;;  %p2169_p12 = scmp.ne.s32.totalorder %s3428_s1, %s2168_s29 }
  0x13   : > { %p2175_p5 = scmp.lt.u32.totalorder %s2168_s29, %s3428_s1 }
  0x14   : > { %p2170_p13 = pneg %p2380_p11 }
  0x16   : > { %p2171_p0 = pnand %p2170_p13, %p2169_p12 }
  0x18   : > { %p2172_p3 = pneg %p2171_p0 }
  0x1a   : > { %p2177_p7 = pnand %p2175_p5, %p2172_p3 }
  0x1c   : > { %2180 = shalt.err (!%p2177_p7)
}
  0x1d   : > { %s2181_s7 = scalar_lea.vmem %s2373_s22, 768  ;;  %p2189_p2 = scmp.lt.s32.totalorder %s2373_s22, %s2373_s22 }
  0x1e   : > { %p2182_p9 = scmp.ne.s32.totalorder %s2373_s22, %s2181_s7  ;;  %p2190_p6 = scmp.lt.s32.totalorder %s2181_s7, %s2181_s7 }
  0x20   : > { %p2184_p10 = pnand %p2182_p9, %p2170_p13  ;;  %p2191_p4 = por %p2190_p6, %p2189_p2 }
  0x22   : > { %p2185_p1 = pneg %p2184_p10 }
  0x24   : > { %p2192_p8 = pnand %p2191_p4, %p2185_p1 }
  0x26   : > { %2195 = shalt.err (!%p2192_p8)
}
  0x27   : > { %s2299_s8 = smov 192   ;;  %s2300_s9 = smov 12  }
  0x28   : > { %1632 = dma.hbm_to_vmem [thread:$0]  (!%p2380_p11), %s3428_s1, 768, %s2373_s22, [#allocation7], %s2299_s8, %s2299_s8, %s2300_s9  }
  0x29   : > { %p25_p2 = scmp.eq.s32.totalorder %s24_s26, 0  ;;  %p34_p1 = scmp.ne.s32.totalorder %s2292_s14, %s2288_s13 }
  0x2a   : > { %p35_p4 = scmp.eq.s32.totalorder %s2296_s15, 0  ;;  %p1642_p6 = scmp.lt.s32.totalorder %s2296_s15, 2 }
  0x2b   : > { %s2416_s17 = scalar_select %p25_p2, %s2292_s14, %s27_s25  }
  0x2c   : > { %p36_p8 = por %p35_p4, %p34_p1  ;;  %p3499_p10 = scmp.eq.s32.totalorder %s2350_s16, 1 }
  0x2d   : > { %s148_s27 = sand.u32 1, %s2292_s14   ;;  %s1603_s28 = sshll.u32 %s2296_s15, 12 }
  0x2e   : > { %p2420_p12 = por %p3499_p10, %p34_p1  ;;  %s1583_s29 = sshll.u32 %s148_s27, 8 }
  0x2f   : > { %s2429_s4 = scalar_lea.hbm %s3427_s0, %s1603_s28  ;;  %s152_s22 = scalar_lea.vmem [#allocation3], %s1583_s29 }
  0x30   : > { %s159_s25 = sshll.u32 %s152_s22, 4  ;;  %p2431_p11 = pnand %p1642_p6, %p36_p8  ;;  %s2435_s25 = int_to_ptr.vmem [resolvable:$true] %s159_s25 }
  0x31   : > { %s2437_s5 = scalar_lea.sflag [#allocation4], %s148_s27  ;;  %s2196_s6 = scalar_lea.hbm %s2429_s4, 4096 }
  0x32   : > { %p2197_p13 = scmp.ne.s32.totalorder %s2429_s4, %s2196_s6  ;;  %p2198_p0 = pneg %p2431_p11 }
  0x33   : > { %s2201_s9 = scalar_lea.hbm %s3427_s0, 8192  ;;  %p2202_p7 = scmp.lt.u32.totalorder %s2429_s4, %s3427_s0 }
  0x34   : > { %p2199_p3 = pnand %p2198_p0, %p2197_p13  ;;  %p2203_p9 = scmp.lt.u32.totalorder %s2201_s9, %s2196_s6 }
  0x35   : > { %p2205_p1 = scmp.lt.u32.totalorder %s2196_s6, %s2429_s4 }
  0x36   : > { %p2200_p5 = pneg %p2199_p3  ;;  %p2204_p2 = por %p2203_p9, %p2202_p7 }
  0x38   : > { %p2206_p4 = por %p2205_p1, %p2204_p2 }
  0x3a   : > { %p2207_p6 = pnand %p2206_p4, %p2200_p5 }
  0x3c   : > { %2210 = shalt.err (!%p2207_p6)
}
  0x3d   : > { %s2211_s27 = scalar_lea.vmem %s2435_s25, 4096  ;;  %s2301_s28 = smov [#allocation3]  }
  0x3e   : > { %p2212_p8 = scmp.ne.s32.totalorder %s2435_s25, %s2211_s27  ;;  %s2216_s29 = sshll.u32 %s2301_s28, 4  ;;  %s2217_s29 = int_to_ptr.vmem [resolvable:$false] %s2216_s29 }
  0x3f   : > { %s2218_s23 = scalar_lea.vmem %s2217_s29, 8192  ;;  %p2219_p3 = scmp.lt.s32.totalorder %s2435_s25, %s2217_s29 }
  0x40   : > { %p2214_p10 = pnand %p2212_p8, %p2198_p0  ;;  %p2220_p7 = scmp.lt.s32.totalorder %s2218_s23, %s2211_s27 }
  0x42   : > { %p2215_p13 = pneg %p2214_p10  ;;  %p2221_p9 = por %p2220_p7, %p2219_p3 }
  0x44   : > { %p2222_p2 = pnand %p2221_p9, %p2215_p13 }
  0x46   : > { %2225 = shalt.err (!%p2222_p2)
}
  0x47   : > { %s2302_s30 = smov 128   ;;  %s2303_s22 = smov 8  }
  0x48   : > { %1636 = dma.hbm_to_vmem [thread:$0]  (!%p2431_p11), %s2429_s4, 4096, %s2435_s25, %s2437_s5, %s2302_s30, %s2302_s30, %s2303_s22  }
  0x49   : > { %p3502_p0 = scmp.ne.s32.totalorder %s3497_s20, 0 }
  0x4b   : > { %171 = sbr.rel (%p3502_p0) target bundleno = 769 (0x301), region = 32 }
  0x52   : > { %s2468_s6 = sand.u32 1, %s2288_s13   ;;  %p3503_p5 = scmp.ne.s32.totalorder %s3495_s18, 0 }
  0x53   : > { %s1587_s7 = sshll.u32 %s2468_s6, 8  ;;  %s174_s8 = scalar_lea.sflag [#allocation4], %s2468_s6 }
  0x54   : > { %s2472_s9 = scalar_lea.vmem [#allocation3], %s1587_s7 }
  0x55   : > { %2271 = dma.done.wait (%p3503_p5), %s174_s8, 4096  }
  0x56   : > { %2273 = vsyncadd (%p3503_p5), %s174_s8, 4294963200  ;;  %p3504_p11 = scmp.eq.s32.totalorder %s2350_s16, 0 }
  0x58   : > { %2275 = dma.done.wait (%p3504_p11), [#allocation7], 768   ;;  %p3505_p1 = pmov %p3504_p11 }
  0x59   : > { %vm205_vm0 = vcmask 261120   ;;  %vm208_vm1 = vcmask 254976   ;;  %v2304_v0 = vmov 0.0   ;;  %v275_v1 = vld [vmem:[%s2472_s9 + $0x70] sm:$0xff]  ;;  %v276_v2 = vld [vmem:[%s2472_s9 + $0x78] sm:$0xff]  ;;  %v261_v3 = vld [vmem:[%s2472_s9] sm:$0xff] }
  0x5a   : > { %2277 = vsyncadd (%p3505_p1), [#allocation7], 4294966528  ;;  %206 = vst.msk [vmem:[#allocation2] sm:$0xff] %vm205_vm0, %v2304_v0  ;;  %v277_v4 = vld [vmem:[%s2472_s9 + $0x80] sm:$0xff]  ;;  %v262_v7 = vld [vmem:[%s2472_s9 + $0x8] sm:$0xff]  ;;  %vm492_vm2 = vcmask 1046528  }
  0x5b   : > { %231 = vst.msk [vmem:[#allocation2 + $0xc0] sm:$0xff] %vm205_vm0, %v2304_v0  ;;  %232 = vst.msk [vmem:[#allocation2 + $0xc8] sm:$0xff] %vm205_vm0, %v2304_v0  ;;  %v278_v8 = vld [vmem:[%s2472_s9 + $0x88] sm:$0xff]  ;;  %v263_v9 = vld [vmem:[%s2472_s9 + $0x10] sm:$0xff]  ;;  %vm669_vm3 = vcmask 1045504   ;;  %s1589_s27 = sshll.u32 %s2468_s6, 6 }
  0x5c   : > { %207 = vst.msk [vmem:[#allocation2 + $0x8] sm:$0xff] %vm205_vm0, %v2304_v0  ;;  %210 = vst.msk [vmem:[#allocation2 + $0x18] sm:$0xff] %vm205_vm0, %v2304_v0  ;;  %v279_v10 = vld [vmem:[%s2472_s9 + $0x90] sm:$0xff]  ;;  %v264_v11 = vld [vmem:[%s2472_s9 + $0x18] sm:$0xff]  ;;  %s203_s28 = scalar_lea.vmem [#allocation8], %s1589_s27  ;;  %s1604_s23 = sshll.u32 %s2350_s16, 10 }
  0x5d   : > { %211 = vst.msk [vmem:[#allocation2 + $0x20] sm:$0xff] %vm205_vm0, %v2304_v0  ;;  %213 = vst.msk [vmem:[#allocation2 + $0x30] sm:$0xff] %vm205_vm0, %v2304_v0  ;;  %v280_v12 = vld [vmem:[%s2472_s9 + $0x98] sm:$0xff]  ;;  %v265_v13 = vld [vmem:[%s2472_s9 + $0x20] sm:$0xff]  ;;  %s1496_s29 = sshll.u32 %s203_s28, 4  ;;  %s3383_s16 = scalar_lea.hbm %s3430_s3, %s1604_s23  ;;  %s3378_s29 = int_to_ptr.vmem [resolvable:$true] %s1496_s29 }
  0x5e   : > { %214 = vst.msk [vmem:[#allocation2 + $0x38] sm:$0xff] %vm205_vm0, %v2304_v0  ;;  %216 = vst.msk [vmem:[#allocation2 + $0x48] sm:$0xff] %vm205_vm0, %v2304_v0  ;;  %v281_v14 = vld [vmem:[%s2472_s9 + $0xa0] sm:$0xff]  ;;  %v266_v15 = vld [vmem:[%s2472_s9 + $0x28] sm:$0xff]  ;;  %s1483_s7 = scalar_lea.sflag [#allocation5], %s2468_s6  ;;  %s2226_s8 = scalar_lea.vmem %s3378_s29, 1024 }
  0x5f   : > { %217 = vst.msk [vmem:[#allocation2 + $0x50] sm:$0xff] %vm205_vm0, %v2304_v0  ;;  %219 = vst.msk [vmem:[#allocation2 + $0x60] sm:$0xff] %vm205_vm0, %v2304_v0  ;;  %v282_v17 = vld [vmem:[%s2472_s9 + $0xa8] sm:$0xff]  ;;  %v267_v18 = vld [vmem:[%s2472_s9 + $0x30] sm:$0xff]  ;;  %p2227_p4 = scmp.ne.s32.totalorder %s3378_s29, %s2226_s8 }
  0x60   : > { %220 = vst.msk [vmem:[#allocation2 + $0x68] sm:$0xff] %vm205_vm0, %v2304_v0  ;;  %222 = vst.msk [vmem:[#allocation2 + $0x78] sm:$0xff] %vm205_vm0, %v2304_v0  ;;  %v283_v19 = vld [vmem:[%s2472_s9 + $0xb0] sm:$0xff]  ;;  %v268_v21 = vld [vmem:[%s2472_s9 + $0x38] sm:$0xff] }
  0x61   : > { %223 = vst.msk [vmem:[#allocation2 + $0x80] sm:$0xff] %vm205_vm0, %v2304_v0  ;;  %225 = vst.msk [vmem:[#allocation2 + $0x90] sm:$0xff] %vm205_vm0, %v2304_v0  ;;  %v2543_v5 = vld [vmem:[#allocation2] sm:$0xff]  ;;  %v284_v22 = vld [vmem:[%s2472_s9 + $0xb8] sm:$0xff]  ;;  %p2228_p6 = pnand %p2227_p4, %p2420_p12 }
  0x62   : > { %226 = vst.msk [vmem:[#allocation2 + $0x98] sm:$0xff] %vm205_vm0, %v2304_v0  ;;  %228 = vst.msk [vmem:[#allocation2 + $0xa8] sm:$0xff] %vm205_vm0, %v2304_v0  ;;  %v493_v16 = vrot.slane %v2543_v5, 1  ;;  %v269_v23 = vld [vmem:[%s2472_s9 + $0x40] sm:$0xff]  ;;  %v270_v25 = vld [vmem:[%s2472_s9 + $0x48] sm:$0xff] }
  0x63   : > { %229 = vst.msk [vmem:[#allocation2 + $0xb0] sm:$0xff] %vm205_vm0, %v2304_v0  ;;  %234 = vst.msk [vmem:[#allocation2 + $0xd8] sm:$0xff] %vm205_vm0, %v2304_v0  ;;  %v2545_v6 = vld [vmem:[#allocation2 + $0x8] sm:$0xff]  ;;  %v285_v24 = vld [vmem:[%s2472_s9 + $0xc0] sm:$0xff]  ;;  %p2229_p8 = pneg %p2228_p6 }
  0x64   : > { %235 = vst.msk [vmem:[#allocation2 + $0xe0] sm:$0xff] %vm205_vm0, %v2304_v0  ;;  %237 = vst.msk [vmem:[#allocation2 + $0xf0] sm:$0xff] %vm205_vm0, %v2304_v0  ;;  %v494_v20 = vrot.slane %v2545_v6, 1  ;;  %v286_v26 = vld [vmem:[%s2472_s9 + $0xc8] sm:$0xff]  ;;  %v271_v30 = vld [vmem:[%s2472_s9 + $0x50] sm:$0xff] }
  0x65   : > { %238 = vst.msk [vmem:[#allocation2 + $0xf8] sm:$0xff] %vm205_vm0, %v2304_v0  ;;  %240 = vst.msk [vmem:[#allocation2 + $0x108] sm:$0xff] %vm205_vm0, %v2304_v0  ;;  %v287_v31 = vld [vmem:[%s2472_s9 + $0xd0] sm:$0xff]  ;;  %v272_v45 = vld [vmem:[%s2472_s9 + $0x58] sm:$0xff] }
  0x66   : > { %241 = vst.msk [vmem:[#allocation2 + $0x110] sm:$0xff] %vm205_vm0, %v2304_v0  ;;  %243 = vst.msk [vmem:[#allocation2 + $0x120] sm:$0xff] %vm205_vm0, %v2304_v0  ;;  %v495_v32 = vsel %vm492_vm2, %v493_v16, %v494_v20  ;;  %v288_v46 = vld [vmem:[%s2472_s9 + $0xd8] sm:$0xff]  ;;  %v273_v55 = vld [vmem:[%s2472_s9 + $0x60] sm:$0xff] }
  0x67   : > { %244 = vst.msk [vmem:[#allocation2 + $0x128] sm:$0xff] %vm205_vm0, %v2304_v0  ;;  %246 = vst.msk [vmem:[#allocation2 + $0x138] sm:$0xff] %vm205_vm0, %v2304_v0  ;;  %v289_v56 = vld [vmem:[%s2472_s9 + $0xe0] sm:$0xff]  ;;  %v274_v57 = vld [vmem:[%s2472_s9 + $0x68] sm:$0xff] }
  0x68   : > { %247 = vst.msk [vmem:[#allocation2 + $0x140] sm:$0xff] %vm205_vm0, %v2304_v0  ;;  %249 = vst.msk [vmem:[#allocation2 + $0x150] sm:$0xff] %vm205_vm0, %v2304_v0  ;;  %v290_v61 = vld [vmem:[%s2472_s9 + $0xe8] sm:$0xff] }
  0x69   : > { %250 = vst.msk [vmem:[#allocation2 + $0x158] sm:$0xff] %vm205_vm0, %v2304_v0  ;;  %252 = vst.msk [vmem:[#allocation2 + $0x168] sm:$0xff] %vm205_vm0, %v2304_v0 }
  0x6a   : > { %253 = vst.msk [vmem:[#allocation2 + $0x170] sm:$0xff] %vm205_vm0, %v2304_v0  ;;  %255 = vst.msk [vmem:[#allocation2 + $0x180] sm:$0xff] %vm205_vm0, %v2304_v0 }
  0x6b   : > { %256 = vst.msk [vmem:[#allocation2 + $0x188] sm:$0xff] %vm205_vm0, %v2304_v0  ;;  %258 = vst.msk [vmem:[#allocation2 + $0x198] sm:$0xff] %vm205_vm0, %v2304_v0 }
  0x6c   : > { %259 = vst.msk [vmem:[#allocation2 + $0x1a0] sm:$0xff] %vm205_vm0, %v2304_v0  ;;  %308 = vst.msk [vmem:[#allocation2 + $0xc1] sm:$0xff] %vm205_vm0, %v275_v1 }
  0x6d   : > { %233 = vst.msk [vmem:[#allocation2 + $0xd0] sm:$0x3] %vm208_vm1, %v2304_v0  ;;  %209 = vst.msk [vmem:[#allocation2 + $0x10] sm:$0x3] %vm208_vm1, %v2304_v0 }
  0x6e   : > { %212 = vst.msk [vmem:[#allocation2 + $0x28] sm:$0x3] %vm208_vm1, %v2304_v0  ;;  %215 = vst.msk [vmem:[#allocation2 + $0x40] sm:$0x3] %vm208_vm1, %v2304_v0 }
  0x6f   : > { %218 = vst.msk [vmem:[#allocation2 + $0x58] sm:$0x3] %vm208_vm1, %v2304_v0  ;;  %221 = vst.msk [vmem:[#allocation2 + $0x70] sm:$0x3] %vm208_vm1, %v2304_v0 }
  0x70   : > { %224 = vst.msk [vmem:[#allocation2 + $0x88] sm:$0x3] %vm208_vm1, %v2304_v0  ;;  %227 = vst.msk [vmem:[#allocation2 + $0xa0] sm:$0x3] %vm208_vm1, %v2304_v0 }
  0x71   : > { %230 = vst.msk [vmem:[#allocation2 + $0xb8] sm:$0x3] %vm208_vm1, %v2304_v0  ;;  %236 = vst.msk [vmem:[#allocation2 + $0xe8] sm:$0x3] %vm208_vm1, %v2304_v0 }
  0x72   : > { %239 = vst.msk [vmem:[#allocation2 + $0x100] sm:$0x3] %vm208_vm1, %v2304_v0  ;;  %242 = vst.msk [vmem:[#allocation2 + $0x118] sm:$0x3] %vm208_vm1, %v2304_v0 }
  0x73   : > { %245 = vst.msk [vmem:[#allocation2 + $0x130] sm:$0x3] %vm208_vm1, %v2304_v0  ;;  %248 = vst.msk [vmem:[#allocation2 + $0x148] sm:$0x3] %vm208_vm1, %v2304_v0  ;;  %v2583_v27 = vld [vmem:[#allocation2 + $0xc0] sm:$0xff] }
  0x74   : > { %251 = vst.msk [vmem:[#allocation2 + $0x160] sm:$0x3] %vm208_vm1, %v2304_v0  ;;  %254 = vst.msk [vmem:[#allocation2 + $0x178] sm:$0x3] %vm208_vm1, %v2304_v0  ;;  %v1686_v29 = vpack.i.bf16 %v2583_v27, %v2543_v5  ;;  %v533_v33 = vrot.slane %v2583_v27, 1 }
  0x75   : > { %257 = vst.msk [vmem:[#allocation2 + $0x190] sm:$0x3] %vm208_vm1, %v2304_v0  ;;  %260 = vst.msk [vmem:[#allocation2 + $0x1a8] sm:$0x3] %vm208_vm1, %v2304_v0  ;;  %v2621_v47 = vld [vmem:[#allocation2 + $0x10] sm:$0x3] }
  0x76   : > { %309 = vst.msk [vmem:[#allocation2 + $0xc9] sm:$0xff] %vm205_vm0, %v276_v2  ;;  %294 = vst.msk [vmem:[#allocation2 + $0x19] sm:$0xff] %vm205_vm0, %v261_v3  ;;  %1687 = vxpose.xlu0.b32.start [1/16] (narrow) %v1686_v29, 32  ;;  %v496_v53 = vrot.slane %v2621_v47, 1 }
  0x77   : > { %310 = vst.msk [vmem:[#allocation2 + $0xd9] sm:$0xff] %vm205_vm0, %v277_v4  ;;  %295 = vst.msk [vmem:[#allocation2 + $0x21] sm:$0xff] %vm205_vm0, %v262_v7 }
  0x78   : > { %311 = vst.msk [vmem:[#allocation2 + $0xe1] sm:$0xff] %vm205_vm0, %v278_v8  ;;  %296 = vst.msk [vmem:[#allocation2 + $0x31] sm:$0xff] %vm205_vm0, %v263_v9  ;;  %v497_v59 = vsel %vm492_vm2, %v494_v20, %v496_v53 }
  0x79   : > { %312 = vst.msk [vmem:[#allocation2 + $0xf1] sm:$0xff] %vm205_vm0, %v279_v10  ;;  %297 = vst.msk [vmem:[#allocation2 + $0x39] sm:$0xff] %vm205_vm0, %v264_v11 }
  0x7a   : > { %313 = vst.msk [vmem:[#allocation2 + $0xf9] sm:$0xff] %vm205_vm0, %v280_v12  ;;  %298 = vst.msk [vmem:[#allocation2 + $0x49] sm:$0xff] %vm205_vm0, %v265_v13 }
  0x7b   : > { %314 = vst.msk [vmem:[#allocation2 + $0x109] sm:$0xff] %vm205_vm0, %v281_v14  ;;  %299 = vst.msk [vmem:[#allocation2 + $0x51] sm:$0xff] %vm205_vm0, %v266_v15 }
  0x7c   : > { %315 = vst.msk [vmem:[#allocation2 + $0x111] sm:$0xff] %vm205_vm0, %v282_v17  ;;  %300 = vst.msk [vmem:[#allocation2 + $0x61] sm:$0xff] %vm205_vm0, %v267_v18 }
  0x7d   : > { %316 = vst.msk [vmem:[#allocation2 + $0x121] sm:$0xff] %vm205_vm0, %v283_v19  ;;  %301 = vst.msk [vmem:[#allocation2 + $0x69] sm:$0xff] %vm205_vm0, %v268_v21  ;;  %v2585_v28 = vld [vmem:[#allocation2 + $0xc8] sm:$0xff]  ;;  %v2604_v37 = vld [vmem:[#allocation2 + $0x18] sm:$0xff] }
  0x7e   : > { %317 = vst.msk [vmem:[#allocation2 + $0x129] sm:$0xff] %vm205_vm0, %v284_v22  ;;  %302 = vst.msk [vmem:[#allocation2 + $0x79] sm:$0xff] %vm205_vm0, %v269_v23  ;;  %v534_v34 = vrot.slane %v2585_v28, 1  ;;  %v1688_v35 = vpack.i.bf16 %v2585_v28, %v2545_v6  ;;  %v2606_v38 = vld [vmem:[#allocation2 + $0xd8] sm:$0xff]  ;;  %v2609_v40 = vld [vmem:[#allocation2 + $0x20] sm:$0xff]  ;;  %v498_v43 = vrot.slane %v2604_v37, 1 }
  0x7f   : > { %3506 = vst [vmem:[#allocation12_spill] sm:$0xff] %v2583_v27  ;;  %3507 = vst [vmem:[#allocation13_spill] sm:$0xff] %v2585_v28  ;;  %v2613_v41 = vpack.i.bf16 %v2606_v38, %v2604_v37  ;;  %v2615_v42 = vld [vmem:[#allocation2 + $0xe0] sm:$0xff]  ;;  %v499_v44 = vrot.slane %v2609_v40, 1  ;;  %v538_v48 = vrot.slane %v2606_v38, 1  ;;  %v2625_v50 = vld [vmem:[#allocation2 + $0x30] sm:$0xff] }
  0x80   : > { %318 = vst.msk [vmem:[#allocation2 + $0x139] sm:$0xff] %vm205_vm0, %v285_v24  ;;  %303 = vst.msk [vmem:[#allocation2 + $0x81] sm:$0xff] %vm205_vm0, %v270_v25  ;;  %v2602_v36 = vsel %vm492_vm2, %v533_v33, %v534_v34  ;;  %1689 = vxpose.xlu0.b32.cont [2/16] (narrow) %v1688_v35, 32  ;;  %v539_v49 = vrot.slane %v2615_v42, 1  ;;  %v2627_v51 = vld [vmem:[#allocation2 + $0xf0] sm:$0xff]  ;;  %v2641_v58 = vpack.i.bf16 %v2615_v42, %v2609_v40  ;;  %v2667_v8 = vld [vmem:[#allocation2 + $0x38] sm:$0xff] }
  0x81   : > { %319 = vst.msk [vmem:[#allocation2 + $0x141] sm:$0xff] %vm205_vm0, %v286_v26  ;;  %304 = vst.msk [vmem:[#allocation2 + $0x91] sm:$0xff] %vm205_vm0, %v271_v30  ;;  %v1738_v39 = vpack.i.bf16 %v2602_v36, %v495_v32  ;;  %v2631_v52 = vld [vmem:[#allocation2 + $0xd0] sm:$0x3]  ;;  %v500_v60 = vsel %vm492_vm2, %v498_v43, %v499_v44  ;;  %v2649_v62 = vld [vmem:[#allocation2 + $0x28] sm:$0x3]  ;;  %v2665_v7 = vpack.i.bf16 %v2627_v51, %v2625_v50 }
  0x82   : > { %320 = vst.msk [vmem:[#allocation2 + $0x151] sm:$0xff] %vm205_vm0, %v287_v31  ;;  %3508 = vst [vmem:[#allocation14_spill] sm:$0xff] %v2602_v36  ;;  %v536_v54 = vrot.slane %v2631_v52, 1  ;;  %v2651_v63 = vld [vmem:[#allocation2 + $0xe8] sm:$0x3]  ;;  %v2657_v1 = vsel %vm492_vm2, %v538_v48, %v539_v49  ;;  %v501_v2 = vrot.slane %v2649_v62, 1 }
  0x83   : > { %1739 = vxpose.xlu1.b32.start [1/16] (narrow) %v1738_v39, 32  ;;  %305 = vst.msk [vmem:[#allocation2 + $0x99] sm:$0xff] %vm205_vm0, %v272_v45  ;;  %321 = vst.msk [vmem:[#allocation2 + $0x159] sm:$0xff] %vm205_vm0, %v288_v46  ;;  %v541_v3 = vrot.slane %v2651_v63, 1  ;;  %v2669_v9 = vld [vmem:[#allocation2 + $0xf8] sm:$0xff]  ;;  %v2673_v10 = vpack.i.bf16 %v2657_v1, %v500_v60  ;;  %v503_v11 = vrot.slane %v2625_v50, 1 }
  0x84   : > { %1691 = vxpose.xlu0.b32.cont [3/16] (narrow) %v2613_v41, 32  ;;  %306 = vst.msk [vmem:[#allocation2 + $0xa9] sm:$0xff] %vm205_vm0, %v273_v55  ;;  %322 = vst.msk [vmem:[#allocation2 + $0x169] sm:$0xff] %vm205_vm0, %v289_v56  ;;  %v2654_v0 = vsel %vm492_vm2, %v534_v34, %v536_v54  ;;  %v504_v12 = vrot.slane %v2667_v8, 1  ;;  %v543_v13 = vrot.slane %v2627_v51, 1  ;;  %v502_v14 = vsel %vm492_vm2, %v499_v44, %v501_v2  ;;  %v2692_v20 = vld [vmem:[#allocation2 + $0x48] sm:$0xff] }
  0x85   : > { %307 = vst.msk [vmem:[#allocation2 + $0xb1] sm:$0xff] %vm205_vm0, %v274_v57  ;;  %3509 = vst [vmem:[#allocation15_spill] sm:$0xff] %v2654_v0  ;;  %v1740_v4 = vpack.i.bf16 %v2654_v0, %v497_v59  ;;  %v2680_v15 = vsel %vm492_vm2, %v539_v49, %v541_v3  ;;  %v544_v16 = vrot.slane %v2669_v9, 1  ;;  %v2683_v17 = vld [vmem:[#allocation2 + $0x40] sm:$0x3]  ;;  %v2690_v19 = vpack.i.bf16 %v2669_v9, %v2667_v8  ;;  %v2694_v21 = vld [vmem:[#allocation2 + $0x108] sm:$0xff] }
  0x86   : > { %3510 = vst [vmem:[#allocation16_spill] sm:$0xff] %v2657_v1  ;;  %323 = vst.msk [vmem:[#allocation2 + $0x171] sm:$0xff] %vm205_vm0, %v290_v61  ;;  %v2685_v18 = vld [vmem:[#allocation2 + $0x100] sm:$0x3]  ;;  %v2698_v22 = vpack.i.bf16 %v2680_v15, %v502_v14  ;;  %v506_v23 = vrot.slane %v2683_v17, 1  ;;  %v2703_v25 = vsel %vm492_vm2, %v503_v11, %v504_v12  ;;  %v2710_v29 = vpack.i.bf16 %v2694_v21, %v2692_v20  ;;  %v2712_v30 = vld [vmem:[#allocation2 + $0x50] sm:$0xff] }
  0x87   : > { %1741 = vxpose.xlu1.b32.cont [2/16] (narrow) %v1740_v4, 32  ;;  %3511 = vst [vmem:[#allocation17_spill] sm:$0xff] %v2673_v10  ;;  %3512 = vst [vmem:[#allocation18_spill] sm:$0xff] %v2680_v15  ;;  %v546_v24 = vrot.slane %v2685_v18, 1  ;;  %v2706_v26 = vsel %vm492_vm2, %v543_v13, %v544_v16  ;;  %v2714_v31 = vld [vmem:[#allocation2 + $0x110] sm:$0xff]  ;;  %v508_v43 = vrot.slane %v2692_v20, 1 }
  0x88   : > { %1693 = vxpose.xlu0.b32.cont [4/16] (narrow) %v2641_v58, 32  ;;  %3513 = vst [vmem:[#allocation19_spill] sm:$0xff] %v2698_v22  ;;  %3514 = vst [vmem:[#allocation20_spill] sm:$0xff] %v2703_v25  ;;  %v2720_v32 = vpack.i.bf16 %v2706_v26, %v2703_v25  ;;  %v2723_v33 = vsel %vm492_vm2, %v504_v12, %v506_v23  ;;  %v2728_v35 = vld [vmem:[#allocation2 + $0x58] sm:$0x3]  ;;  %v509_v44 = vrot.slane %v2712_v30, 1 }
  0x89   : > { %3515 = vst [vmem:[#allocation21_spill] sm:$0xff] %v2706_v26  ;;  %3517 = vst [vmem:[#allocation23_spill] sm:$0xff] %v2723_v33  ;;  %v2726_v34 = vsel %vm492_vm2, %v544_v16, %v546_v24  ;;  %v2730_v39 = vld [vmem:[#allocation2 + $0x118] sm:$0x3]  ;;  %v548_v45 = vrot.slane %v2694_v21, 1  ;;  %v549_v46 = vrot.slane %v2714_v31, 1  ;;  %v2739_v48 = vpack.i.bf16 %v2714_v31, %v2712_v30 }
  0x8a   : > { %3516 = vst [vmem:[#allocation22_spill] sm:$0xff] %v2720_v32  ;;  %3518 = vst [vmem:[#allocation24_spill] sm:$0xff] %v2726_v34  ;;  %v2741_v49 = vld [vmem:[#allocation2 + $0x60] sm:$0xff]  ;;  %v2748_v54 = vpack.i.bf16 %v2726_v34, %v2723_v33  ;;  %v511_v55 = vrot.slane %v2728_v35, 1  ;;  %v551_v56 = vrot.slane %v2730_v39, 1  ;;  %v2753_v57 = vsel %vm492_vm2, %v508_v43, %v509_v44  ;;  %v2763_v61 = vld [vmem:[#allocation2 + $0x68] sm:$0xff] }
  0x8b   : > { %1743 = vxpose.xlu1.b32.cont [3/16] (narrow) %v2673_v10, 32  ;;  %v2743_v53 = vld [vmem:[#allocation2 + $0x120] sm:$0xff]  ;;  %3520 = vst [vmem:[#allocation26_spill] sm:$0xff] %v2753_v57  ;;  %v2756_v59 = vsel %vm492_vm2, %v548_v45, %v549_v46  ;;  %v2765_v2 = vld [vmem:[#allocation2 + $0x128] sm:$0xff]  ;;  %v2778_v12 = vld [vmem:[#allocation2 + $0x70] sm:$0x3] }
  0x8c   : > { %1695 = vxpose.xlu0.b32.cont [5/16] (narrow) %v2665_v7, 32  ;;  %3519 = vst [vmem:[#allocation25_spill] sm:$0xff] %v2748_v54  ;;  %3521 = vst [vmem:[#allocation27_spill] sm:$0xff] %v2756_v59  ;;  %v2760_v60 = vpack.i.bf16 %v2743_v53, %v2741_v49  ;;  %v2770_v3 = vpack.i.bf16 %v2756_v59, %v2753_v57  ;;  %v2773_v4 = vsel %vm492_vm2, %v509_v44, %v511_v55  ;;  %v2784_v24 = vld [vmem:[#allocation2 + $0x130] sm:$0x3]  ;;  %v291_v43 = vld [vmem:[%s2472_s9 + $0xf0] sm:$0xff] }
  0x8d   : > { %3523 = vst [vmem:[#allocation29_spill] sm:$0xff] %v2773_v4  ;;  %v2776_v11 = vsel %vm492_vm2, %v549_v46, %v551_v56  ;;  %v513_v13 = vrot.slane %v2741_v49, 1  ;;  %v514_v14 = vrot.slane %v2763_v61, 1  ;;  %v553_v16 = vrot.slane %v2743_v53, 1  ;;  %v2792_v45 = vld [vmem:[#allocation2 + $0x78] sm:$0xff]  ;;  %324 = vst.msk [vmem:[#allocation2 + $0x181] sm:$0xff] %vm205_vm0, %v291_v43 }
  0x8e   : > { %3522 = vst [vmem:[#allocation28_spill] sm:$0xff] %v2770_v3  ;;  %3524 = vst [vmem:[#allocation30_spill] sm:$0xff] %v2776_v11  ;;  %v554_v23 = vrot.slane %v2765_v2, 1  ;;  %v2790_v44 = vpack.i.bf16 %v2765_v2, %v2763_v61  ;;  %v2794_v46 = vld [vmem:[#allocation2 + $0x138] sm:$0xff]  ;;  %v2799_v55 = vpack.i.bf16 %v2776_v11, %v2773_v4  ;;  %v516_v56 = vrot.slane %v2778_v12, 1  ;;  %v292_v33 = vld [vmem:[%s2472_s9 + $0xf8] sm:$0xff] }
  0x8f   : > { %1745 = vxpose.xlu1.b32.cont [4/16] (narrow) %v2698_v22, 32  ;;  %v556_v15 = vrot.slane %v2784_v24, 1  ;;  %v2805_v1 = vsel %vm492_vm2, %v513_v13, %v514_v14  ;;  %v2812_v59 = vpack.i.bf16 %v2794_v46, %v2792_v45  ;;  %v2816_v4 = vld [vmem:[#allocation2 + $0x80] sm:$0xff]  ;;  %v2831_v34 = vld [vmem:[#allocation2 + $0x88] sm:$0x3]  ;;  %325 = vst.msk [vmem:[#allocation2 + $0x189] sm:$0xff] %vm205_vm0, %v292_v33 }
  0x90   : > { %1697 = vxpose.xlu0.b32.cont [6/16] (narrow) %v2690_v19, 32  ;;  %3525 = vst [vmem:[#allocation31_spill] sm:$0xff] %v2799_v55  ;;  %3526 = vst [vmem:[#allocation32_spill] sm:$0xff] %v2805_v1  ;;  %v2808_v57 = vsel %vm492_vm2, %v553_v16, %v554_v23  ;;  %v2818_v11 = vld [vmem:[#allocation2 + $0x140] sm:$0xff]  ;;  %v2826_v16 = vsel %vm492_vm2, %v514_v14, %v516_v56  ;;  %v518_v25 = vrot.slane %v2792_v45, 1  ;;  %v519_v26 = vrot.slane %v2816_v4, 1 }
  0x91   : > { %3527 = vst [vmem:[#allocation33_spill] sm:$0xff] %v2808_v57  ;;  %3528 = vst [vmem:[#allocation34_spill] sm:$0xff] %v2812_v59  ;;  %v2823_v13 = vpack.i.bf16 %v2808_v57, %v2805_v1  ;;  %v2829_v43 = vsel %vm492_vm2, %v554_v23, %v556_v15  ;;  %v558_v0 = vrot.slane %v2794_v46, 1  ;;  %v559_v36 = vrot.slane %v2818_v11, 1  ;;  %v2838_v1 = vld [vmem:[#allocation2 + $0x148] sm:$0x3] }
  0x92   : > { %3530 = vst [vmem:[#allocation36_spill] sm:$0xff] %v2826_v16  ;;  %3531 = vst [vmem:[#allocation37_spill] sm:$0xff] %v2829_v43  ;;  %v2843_v15 = vpack.i.bf16 %v2818_v11, %v2816_v4  ;;  %v2845_v14 = vld [vmem:[#allocation2 + $0x90] sm:$0xff]  ;;  %v2852_v33 = vpack.i.bf16 %v2829_v43, %v2826_v16  ;;  %v521_v56 = vrot.slane %v2831_v34, 1  ;;  %v561_v57 = vrot.slane %v2838_v1, 1  ;;  %v2869_v16 = vld [vmem:[#allocation2 + $0x158] sm:$0xff] }
  0x93   : > { %1747 = vxpose.xlu1.b32.cont [5/16] (narrow) %v2720_v32, 32  ;;  %3529 = vst [vmem:[#allocation35_spill] sm:$0xff] %v2823_v13  ;;  %3533 = vst [vmem:[#allocation39_spill] sm:$0xff] %v2845_v14  ;;  %v2847_v23 = vld [vmem:[#allocation2 + $0x150] sm:$0xff]  ;;  %v2882_v32 = vld [vmem:[#allocation2 + $0xa0] sm:$0x3] }
  0x94   : > { %1699 = vxpose.xlu0.b32.cont [7/16] (narrow) %v2710_v29, 32  ;;  %3532 = vst [vmem:[#allocation38_spill] sm:$0xff] %v2843_v15  ;;  %3534 = vst [vmem:[#allocation40_spill] sm:$0xff] %v2847_v23  ;;  %v523_v22 = vrot.slane %v2845_v14, 1  ;;  %s2306_s9 = smov [#allocation8]  }
  0x95   : > { %3535 = vst [vmem:[#allocation41_spill] sm:$0xff] %v2852_v33  ;;  %3540 = vst [vmem:[#allocation46_spill] sm:$0xff] %v2869_v16  ;;  %s2230_s18 = sshll.u32 %s2306_s9, 4  ;;  %s2231_s18 = int_to_ptr.vmem [resolvable:$false] %s2230_s18 }
  0x96   : > { %3544 = vst [vmem:[#allocation50_spill] sm:$0xff] %v2882_v32  ;;  %s2232_s20 = scalar_lea.vmem %s2231_s18, 2048  ;;  %p2233_p10 = scmp.lt.s32.totalorder %s3378_s29, %s2231_s18 }
  0x97   : > { %1749 = vxpose.xlu1.b32.cont [6/16] (narrow) %v2748_v54, 32  ;;  %v2864_v54 = vpack.i.bf16 %v2847_v23, %v2845_v14  ;;  %v2940_v14 = vld [vmem:[#allocation2 + $0xb8] sm:$0x3]  ;;  %p2234_p13 = scmp.lt.s32.totalorder %s2232_s20, %s2226_s8 }
  0x98   : > { %1701 = vxpose.xlu0.b32.cont [8/16] (narrow) %v2739_v48, 32 }
  0x99   : > { %3538 = vst [vmem:[#allocation44_spill] sm:$0xff] %v2864_v54  ;;  %p2235_p3 = por %p2234_p13, %p2233_p10 }
  0x9b   : > { %1751 = vxpose.xlu1.b32.cont [7/16] (narrow) %v2770_v3, 32  ;;  %v2860_v3 = vsel %vm492_vm2, %v558_v0, %v559_v36  ;;  %v2880_v0 = vsel %vm492_vm2, %v559_v36, %v561_v57  ;;  %v2901_v57 = vld [vmem:[#allocation2 + $0x168] sm:$0xff]  ;;  %p2236_p7 = pnand %p2235_p3, %p2229_p8 }
  0x9c   : > { %1703 = vxpose.xlu0.b32.cont [9/16] (narrow) %v2760_v60, 32  ;;  %3537 = vst [vmem:[#allocation43_spill] sm:$0xff] %v2860_v3  ;;  %3543 = vst [vmem:[#allocation49_spill] sm:$0xff] %v2880_v0 }
  0x9f   : > { %1753 = vxpose.xlu1.b32.cont [8/16] (narrow) %v2799_v55, 32  ;;  %v2857_v55 = vsel %vm492_vm2, %v518_v25, %v519_v26  ;;  %v2877_v25 = vsel %vm492_vm2, %v519_v26, %v521_v56  ;;  %v2899_v26 = vld [vmem:[#allocation2 + $0xa8] sm:$0xff]  ;;  %v526_v56 = vrot.slane %v2882_v32, 1 }
  0xa0   : > { %1705 = vxpose.xlu0.b32.cont [10/16] (narrow) %v2790_v44, 32  ;;  %3536 = vst [vmem:[#allocation42_spill] sm:$0xff] %v2857_v55  ;;  %v2874_v43 = vpack.i.bf16 %v2860_v3, %v2857_v55  ;;  %3542 = vst [vmem:[#allocation48_spill] sm:$0xff] %v2877_v25  ;;  %v2896_v36 = vpack.i.bf16 %v2880_v0, %v2877_v25  ;;  %v670_v25 = vrot.slane %v2543_v5, 2  ;;  %v671_v0 = vrot.slane %v2545_v6, 2 }
  0xa2   : > { %3541 = vst [vmem:[#allocation47_spill] sm:$0xff] %v2874_v43  ;;  %3547 = vst [vmem:[#allocation53_spill] sm:$0xff] %v2896_v36 }
  0xa3   : > { %1755 = vxpose.xlu1.b32.cont [9/16] (narrow) %v2823_v13, 32  ;;  %v2867_v13 = vld [vmem:[#allocation2 + $0x98] sm:$0xff] }
  0xa4   : > { %1707 = vxpose.xlu0.b32.cont [11/16] (narrow) %v2812_v59, 32  ;;  %3539 = vst [vmem:[#allocation45_spill] sm:$0xff] %v2867_v13  ;;  %v524_v10 = vrot.slane %v2867_v13, 1  ;;  %v2888_v59 = vld [vmem:[#allocation2 + $0x160] sm:$0x3]  ;;  %v2892_v55 = vpack.i.bf16 %v2869_v16, %v2867_v13  ;;  %v568_v13 = vrot.slane %v2901_v57, 1 }
  0xa5   : > { %3545 = vst [vmem:[#allocation51_spill] sm:$0xff] %v2888_v59  ;;  %v566_v3 = vrot.slane %v2888_v59, 1  ;;  %v2920_v59 = vld [vmem:[#allocation2 + $0xb0] sm:$0xff] }
  0xa6   : > { %3546 = vst [vmem:[#allocation52_spill] sm:$0xff] %v2892_v55  ;;  %3551 = vst [vmem:[#allocation57_spill] sm:$0xff] %v2920_v59  ;;  %v2931_v6 = vsel %vm492_vm2, %v524_v10, %v526_v56  ;;  %v713_v56 = vrot.slane %v2631_v52, 2 }
  0xa7   : > { %1757 = vxpose.xlu1.b32.cont [10/16] (narrow) %v2852_v33, 32  ;;  %v564_v33 = vrot.slane %v2869_v16, 1  ;;  %3554 = vst [vmem:[#allocation60_spill] sm:$0xff] %v2931_v6 }
  0xa8   : > { %1709 = vxpose.xlu0.b32.cont [12/16] (narrow) %v2843_v15, 32  ;;  %v563_v15 = vrot.slane %v2847_v23, 1  ;;  %v2907_v23 = vsel %vm492_vm2, %v523_v22, %v524_v10  ;;  %v2922_v22 = vld [vmem:[#allocation2 + $0x170] sm:$0xff]  ;;  %v672_v10 = vsel %vm669_vm3, %v670_v25, %v671_v0  ;;  %v531_v25 = vrot.slane %v2940_v14, 1 }
  0xa9   : > { %3548 = vst [vmem:[#allocation54_spill] sm:$0xff] %v2907_v23  ;;  %3552 = vst [vmem:[#allocation58_spill] sm:$0xff] %v2922_v22  ;;  %v2934_v32 = vsel %vm492_vm2, %v564_v33, %v566_v3  ;;  %v2950_v3 = vpack.i.bf16 %v2922_v22, %v2920_v59 }
  0xaa   : > { %v2910_v16 = vsel %vm492_vm2, %v563_v15, %v564_v33  ;;  %v711_v15 = vrot.slane %v2585_v28, 2  ;;  %3555 = vst [vmem:[#allocation61_spill] sm:$0xff] %v2934_v32  ;;  %v569_v28 = vrot.slane %v2922_v22, 1 }
  0xab   : > { %1759 = vxpose.xlu1.b32.cont [11/16] (narrow) %v2874_v43, 32  ;;  %3549 = vst [vmem:[#allocation55_spill] sm:$0xff] %v2910_v16  ;;  %v710_v43 = vrot.slane %v2583_v27, 2  ;;  %v2928_v5 = vpack.i.bf16 %v2910_v16, %v2907_v23  ;;  %v528_v27 = vrot.slane %v2899_v26, 1  ;;  %v673_v23 = vrot.slane %v2621_v47, 2 }
  0xac   : > { %1711 = vxpose.xlu0.b32.cont [13/16] (narrow) %v2864_v54, 32  ;;  %v2916_v54 = vpack.i.bf16 %v2901_v57, %v2899_v26  ;;  %v2958_v16 = vpack.i.bf16 %v2934_v32, %v2931_v6  ;;  %v2964_v52 = vsel %vm492_vm2, %v568_v13, %v569_v28  ;;  %v2973_v6 = vsel %vm669_vm3, %v711_v15, %v713_v56 }
  0xad   : > { %3553 = vst [vmem:[#allocation59_spill] sm:$0xff] %v2928_v5  ;;  %v2953_v33 = vsel %vm669_vm3, %v710_v43, %v711_v15  ;;  %3557 = vst [vmem:[#allocation63_spill] sm:$0xff] %v2964_v52  ;;  %v674_v43 = vsel %vm669_vm3, %v671_v0, %v673_v23  ;;  %v715_v23 = vrot.slane %v2606_v38, 2  ;;  %v718_v56 = vrot.slane %v2651_v63, 2 }
  0xae   : > { %3550 = vst [vmem:[#allocation56_spill] sm:$0xff] %v2916_v54  ;;  %v1790_v22 = vpack.i.bf16 %v2953_v33, %v672_v10  ;;  %v3562_v10 = vld [vmem:[#allocation40_spill] sm:$0xff] }
  0xaf   : > { %1761 = vxpose.xlu1.b32.cont [12/16] (narrow) %v2896_v36, 32  ;;  %v2942_v36 = vld [vmem:[#allocation2 + $0x178] sm:$0x3] }
  0xb0   : > { %1713 = vxpose.xlu0.b32.cont [14/16] (narrow) %v2892_v55, 32  ;;  %v529_v55 = vrot.slane %v2920_v59, 1 }
  0xb2   : > { %v2961_v47 = vsel %vm492_vm2, %v528_v27, %v529_v55  ;;  %v676_v27 = vrot.slane %v2609_v40, 2  ;;  %v2986_v0 = vsel %vm492_vm2, %v529_v55, %v531_v25  ;;  %v678_v40 = vrot.slane %v2649_v62, 2 }
  0xb3   : > { %1763 = vxpose.xlu1.b32.cont [13/16] (narrow) %v2928_v5, 32  ;;  %3556 = vst [vmem:[#allocation62_spill] sm:$0xff] %v2961_v47  ;;  %v675_v5 = vrot.slane %v2604_v37, 2  ;;  %v2979_v13 = vpack.i.bf16 %v2964_v52, %v2961_v47  ;;  %v716_v37 = vrot.slane %v2615_v42, 2  ;;  %3558 = vst [vmem:[#allocation64_spill] sm:$0xff] %v2986_v0  ;;  %v1792_v47 = vpack.i.bf16 %v2973_v6, %v674_v43 }
  0xb4   : > { %1715 = vxpose.xlu0.b32.cont [15/16] (narrow) %v2916_v54, 32  ;;  %v571_v54 = vrot.slane %v2942_v36, 1  ;;  %v3010_v63 = vsel %vm669_vm3, %v676_v27, %v678_v40  ;;  %v720_v25 = vrot.slane %v2627_v51, 2  ;;  %v721_v43 = vrot.slane %v2669_v9, 2 }
  0xb5   : > { %v3002_v55 = vsel %vm669_vm3, %v675_v5, %v676_v27  ;;  %v681_v5 = vrot.slane %v2667_v8, 2  ;;  %v728_v42 = vrot.slane %v2730_v39, 2 }
  0xb6   : > { %v2989_v15 = vsel %vm492_vm2, %v569_v28, %v571_v54  ;;  %v3005_v28 = vsel %vm669_vm3, %v715_v23, %v716_v37  ;;  %v3013_v54 = vsel %vm669_vm3, %v716_v37, %v718_v56  ;;  %v723_v23 = vrot.slane %v2685_v18, 2 }
  0xb7   : > { %1765 = vxpose.xlu1.b32.cont [14/16] (narrow) %v2958_v16, 32  ;;  %3559 = vst [vmem:[#allocation65_spill] sm:$0xff] %v2989_v15  ;;  %v2997_v38 = vpack.i.bf16 %v2989_v15, %v2986_v0  ;;  %v1794_v62 = vpack.i.bf16 %v3005_v28, %v3002_v55  ;;  %v1796_v27 = vpack.i.bf16 %v3013_v54, %v3010_v63  ;;  %v740_v0 = vrot.slane %v3562_v10, 2  ;;  %v3569_v10 = vld [vmem:[#allocation44_spill] sm:$0xff] }
  0xb8   : > { %1717 = vxpose.xlu0.b32.end [16/16] (narrow) %v2950_v3, 32  ;;  %v3029_v40 = vsel %vm669_vm3, %v720_v25, %v721_v43  ;;  %v3037_v18 = vsel %vm669_vm3, %v721_v43, %v723_v23  ;;  %v726_v25 = vrot.slane %v2714_v31, 2  ;;  %v691_v23 = vrot.slane %v2763_v61, 2 }
  0xba   : > { %v3061_v39 = vsel %vm669_vm3, %v726_v25, %v728_v42 }
  0xbb   : > { %1767 = vxpose.xlu1.b32.cont [15/16] (narrow) %v2979_v13, 32 }
  0xbc   : > { %1791 = vxpose.xlu0.b32.start [1/16] (narrow) %v1790_v22, 32  ;;  %v680_v22 = vrot.slane %v2625_v50, 2 }
  0xbe   : > { %v3026_v37 = vsel %vm669_vm3, %v680_v22, %v681_v5  ;;  %v725_v22 = vrot.slane %v2694_v21, 2 }
  0xbf   : > { %1769 = vxpose.xlu1.b32.end [16/16] (narrow) %v2997_v38, 32  ;;  %v1798_v56 = vpack.i.bf16 %v3029_v40, %v3026_v37 }
  0xc0   : > { %1793 = vxpose.xlu0.b32.cont [2/16] (narrow) %v1792_v47, 32  ;;  %v683_v47 = vrot.slane %v2683_v17, 2  ;;  %v3053_v43 = vsel %vm669_vm3, %v725_v22, %v726_v25  ;;  %v733_v22 = vrot.slane %v2784_v24, 2 }
  0xc2   : > { %v3034_v17 = vsel %vm669_vm3, %v681_v5, %v683_v47 }
  0xc3   : > { %1843 = vxpose.xlu1.b32.start [1/16] (narrow) %v2613_v41, 32  ;;  %v685_v41 = vrot.slane %v2692_v20, 2  ;;  %v1800_v5 = vpack.i.bf16 %v3037_v18, %v3034_v17 }
  0xc4   : > { %1795 = vxpose.xlu0.b32.cont [3/16] (narrow) %v1794_v62, 32  ;;  %v686_v62 = vrot.slane %v2712_v30, 2 }
  0xc7   : > { %1845 = vxpose.xlu1.b32.cont [2/16] (narrow) %v2641_v58, 32  ;;  %v3050_v58 = vsel %vm669_vm3, %v685_v41, %v686_v62  ;;  %v731_v41 = vrot.slane %v2765_v2, 2 }
  0xc8   : > { %1797 = vxpose.xlu0.b32.cont [4/16] (narrow) %v1796_v27, 32  ;;  %v688_v27 = vrot.slane %v2728_v35, 2  ;;  %v1802_v35 = vpack.i.bf16 %v3053_v43, %v3050_v58 }
  0xc9   : > { %v3085_v24 = vsel %vm669_vm3, %v731_v41, %v733_v22 }
  0xca   : > { %v3056_v47 = vsel %vm669_vm3, %v686_v62, %v688_v27  ;;  %v693_v62 = vrot.slane %v2778_v12, 2 }
  0xcb   : > { %1847 = vxpose.xlu1.b32.cont [3/16] (narrow) %v2665_v7, 32  ;;  %v690_v7 = vrot.slane %v2741_v49, 2  ;;  %v1804_v27 = vpack.i.bf16 %v3061_v39, %v3056_v47 }
  0xcc   : > { %1799 = vxpose.xlu0.b32.cont [5/16] (narrow) %v1798_v56, 32  ;;  %v730_v56 = vrot.slane %v2743_v53, 2  ;;  %v3080_v25 = vsel %vm669_vm3, %v691_v23, %v693_v62 }
  0xcd   : > { %v1808_v62 = vpack.i.bf16 %v3085_v24, %v3080_v25 }
  0xce   : > { %v3077_v42 = vsel %vm669_vm3, %v730_v56, %v731_v41  ;;  %v738_v56 = vrot.slane %v2838_v1, 2 }
  0xcf   : > { %1849 = vxpose.xlu1.b32.cont [4/16] (narrow) %v2690_v19, 32  ;;  %v3074_v19 = vsel %vm669_vm3, %v690_v7, %v691_v23  ;;  %v736_v7 = vrot.slane %v2818_v11, 2  ;;  %v698_v23 = vrot.slane %v2831_v34, 2 }
  0xd0   : > { %1801 = vxpose.xlu0.b32.cont [6/16] (narrow) %v1800_v5, 32  ;;  %v1806_v12 = vpack.i.bf16 %v3077_v42, %v3074_v19  ;;  %v696_v5 = vrot.slane %v2816_v4, 2 }
  0xd1   : > { %v3109_v1 = vsel %vm669_vm3, %v736_v7, %v738_v56 }
  0xd2   : > { %v3104_v22 = vsel %vm669_vm3, %v696_v5, %v698_v23  ;;  %v3564_v23 = vld [vmem:[#allocation34_spill] sm:$0xff] }
  0xd3   : > { %1851 = vxpose.xlu1.b32.cont [5/16] (narrow) %v2710_v29, 32  ;;  %v695_v29 = vrot.slane %v2792_v45, 2 }
  0xd4   : > { %1803 = vxpose.xlu0.b32.cont [7/16] (narrow) %v1802_v35, 32  ;;  %v735_v35 = vrot.slane %v2794_v46, 2 }
  0xd6   : > { %v3101_v41 = vsel %vm669_vm3, %v735_v35, %v736_v7  ;;  %v3563_v35 = vld [vmem:[#allocation46_spill] sm:$0xff]  ;;  %v3566_v7 = vld [vmem:[#allocation51_spill] sm:$0xff] }
  0xd7   : > { %1853 = vxpose.xlu1.b32.cont [6/16] (narrow) %v2739_v48, 32  ;;  %v3098_v48 = vsel %vm669_vm3, %v695_v29, %v696_v5  ;;  %v741_v15 = vrot.slane %v3563_v35, 2  ;;  %v1812_v5 = vpack.i.bf16 %v3109_v1, %v3104_v22  ;;  %v743_v56 = vrot.slane %v3566_v7, 2 }
  0xd8   : > { %1805 = vxpose.xlu0.b32.cont [8/16] (narrow) %v1804_v27, 32  ;;  %v1810_v34 = vpack.i.bf16 %v3101_v41, %v3098_v48  ;;  %v3560_v27 = vld [vmem:[#allocation39_spill] sm:$0xff]  ;;  %v706_v35 = vrot.slane %v2920_v59, 2  ;;  %v708_v59 = vrot.slane %v2940_v14, 2 }
  0xd9   : > { %v3125_v32 = vsel %vm669_vm3, %v740_v0, %v741_v15  ;;  %v3568_v0 = vld [vmem:[#allocation58_spill] sm:$0xff] }
  0xda   : > { %v746_v7 = vrot.slane %v3568_v0, 2  ;;  %v3149_v0 = vsel %vm669_vm3, %v706_v35, %v708_v59  ;;  %v3573_v59 = vld [vmem:[#allocation17_spill] sm:$0xff] }
  0xdb   : > { %1855 = vxpose.xlu1.b32.cont [7/16] (narrow) %v2760_v60, 32  ;;  %v700_v60 = vrot.slane %v3560_v27, 2  ;;  %v3567_v27 = vld [vmem:[#allocation38_spill] sm:$0xff] }
  0xdc   : > { %1807 = vxpose.xlu0.b32.cont [9/16] (narrow) %v1806_v12, 32  ;;  %v3561_v12 = vld [vmem:[#allocation45_spill] sm:$0xff] }
  0xdd   : > { %v701_v29 = vrot.slane %v3561_v12, 2 }
  0xdf   : > { %1857 = vxpose.xlu1.b32.cont [8/16] (narrow) %v2790_v44, 32  ;;  %v3122_v44 = vsel %vm669_vm3, %v700_v60, %v701_v29  ;;  %v745_v60 = vrot.slane %v2901_v57, 2 }
  0xe0   : > { %1809 = vxpose.xlu0.b32.cont [10/16] (narrow) %v1808_v62, 32  ;;  %v3565_v62 = vld [vmem:[#allocation50_spill] sm:$0xff]  ;;  %v1814_v12 = vpack.i.bf16 %v3125_v32, %v3122_v44 }
  0xe1   : > { %v703_v52 = vrot.slane %v3565_v62, 2  ;;  %v3136_v62 = vsel %vm669_vm3, %v741_v15, %v743_v56  ;;  %v3570_v56 = vld [vmem:[#allocation52_spill] sm:$0xff] }
  0xe3   : > { %1859 = vxpose.xlu1.b32.cont [9/16] (narrow) %v3564_v23, 32  ;;  %v3133_v23 = vsel %vm669_vm3, %v701_v29, %v703_v52  ;;  %v747_v29 = vsel %vm669_vm3, %v745_v60, %v746_v7 }
  0xe4   : > { %1811 = vxpose.xlu0.b32.cont [11/16] (narrow) %v1810_v34, 32  ;;  %v705_v34 = vrot.slane %v2899_v26, 2 }
  0xe6   : > { %v707_v52 = vsel %vm669_vm3, %v705_v34, %v706_v35  ;;  %v3572_v34 = vld [vmem:[#allocation12_spill] sm:$0xff]  ;;  %v3574_v35 = vld [vmem:[#allocation13_spill] sm:$0xff] }
  0xe7   : > { %1861 = vxpose.xlu1.b32.cont [10/16] (narrow) %v3567_v27, 32  ;;  %v748_v27 = vrot.slane %v2942_v36, 2  ;;  %v1818_v15 = vpack.i.bf16 %v747_v29, %v707_v52  ;;  %v3157_v36 = vld [vmem:[#allocation2 + $0x180] sm:$0xff] }
  0xe8   : > { %1813 = vxpose.xlu0.b32.cont [12/16] (narrow) %v1812_v5, 32  ;;  %v1816_v5 = vpack.i.bf16 %v3136_v62, %v3133_v23  ;;  %v1870_v60 = vpack.i.bf16 %v3157_v36, %v3572_v34  ;;  %v3578_v34 = vld [vmem:[#allocation28_spill] sm:$0xff] }
  0xeb   : > { %1863 = vxpose.xlu1.b32.cont [11/16] (narrow) %v3569_v10, 32  ;;  %v3571_v10 = vld [vmem:[#allocation56_spill] sm:$0xff] }
  0xec   : > { %1815 = vxpose.xlu0.b32.cont [13/16] (narrow) %v1814_v12, 32  ;;  %v3152_v12 = vsel %vm669_vm3, %v746_v7, %v748_v27  ;;  %v3575_v27 = vld [vmem:[#allocation19_spill] sm:$0xff] }
  0xed   : > { %v1820_v14 = vpack.i.bf16 %v3152_v12, %v3149_v0 }
  0xef   : > { %1865 = vxpose.xlu1.b32.cont [12/16] (narrow) %v3570_v56, 32  ;;  %v3576_v56 = vld [vmem:[#allocation22_spill] sm:$0xff] }
  0xf0   : > { %1817 = vxpose.xlu0.b32.cont [14/16] (narrow) %v1816_v5, 32  ;;  %v3162_v5 = vld [vmem:[#allocation2 + $0x188] sm:$0xff] }
  0xf1   : > { %v1872_v7 = vpack.i.bf16 %v3162_v5, %v3574_v35  ;;  %v985_v35 = vrot.slane %v3162_v5, 2 }
  0xf3   : > { %1867 = vxpose.xlu1.b32.cont [13/16] (narrow) %v3571_v10, 32  ;;  %v3176_v10 = vpack.i.bf16 %v3026_v37, %v3029_v40  ;;  %v3194_v37 = vpack.i.bf16 %v3056_v47, %v3061_v39  ;;  %v3581_v40 = vld [vmem:[#allocation41_spill] sm:$0xff]  ;;  %v3212_v47 = vpack.i.bf16 %v3098_v48, %v3101_v41  ;;  %v3584_v39 = vld [vmem:[#allocation59_spill] sm:$0xff]  ;;  %v376_v48 = vld [vmem:[#allocation2 + $0x190] sm:$0x3]  ;;  %v3232_v41 = vpack.i.bf16 %v3133_v23, %v3136_v62 }
  0xf4   : > { %1819 = vxpose.xlu0.b32.cont [15/16] (narrow) %v1818_v15, 32  ;;  %v1946_v15 = vpack.i.bf16 %v3002_v55, %v3005_v28  ;;  %v3182_v55 = vpack.i.bf16 %v3034_v17, %v3037_v18  ;;  %v3200_v17 = vpack.i.bf16 %v3074_v19, %v3077_v42  ;;  %v3582_v18 = vld [vmem:[#allocation47_spill] sm:$0xff]  ;;  %v3218_v19 = vpack.i.bf16 %v3104_v22, %v3109_v1 }
  0xf5   : > { %v3224_v42 = vpack.i.bf16 %v3122_v44, %v3125_v32  ;;  %v916_v22 = vrot.slane %v376_v48, 1  ;;  %v3585_v32 = vld [vmem:[#allocation14_spill] sm:$0xff]  ;;  %v3241_v44 = vpack.i.bf16 %v707_v52, %v747_v29  ;;  %v3586_v62 = vld [vmem:[#allocation15_spill] sm:$0xff] }
  0xf7   : > { %1869 = vxpose.xlu1.b32.cont [14/16] (narrow) %v2950_v3, 32  ;;  %v1948_v3 = vpack.i.bf16 %v3010_v63, %v3013_v54  ;;  %v3188_v63 = vpack.i.bf16 %v3050_v58, %v3053_v43  ;;  %v3206_v58 = vpack.i.bf16 %v3080_v25, %v3085_v24  ;;  %v3583_v43 = vld [vmem:[#allocation53_spill] sm:$0xff]  ;;  %v913_v25 = vrot.slane %v3157_v36, 1 }
  0xf8   : > { %1821 = vxpose.xlu0.b32.end [16/16] (narrow) %v1820_v14, 32  ;;  %v3577_v14 = vld [vmem:[#allocation25_spill] sm:$0xff]  ;;  %v914_v24 = vrot.slane %v3162_v5, 1 }
  0xfa   : > { %v3246_v23 = vsel %vm492_vm2, %v914_v24, %v916_v22 }
  0xfb   : > { %1871 = vxpose.xlu1.b32.cont [15/16] (narrow) %v1870_v60, 32  ;;  %v3579_v60 = vld [vmem:[#allocation31_spill] sm:$0xff] }
  0xfc   : > { %1895 = vxpose.xlu0.b32.start [1/16] (narrow) %v3573_v59, 32  ;;  %v3580_v59 = vld [vmem:[#allocation35_spill] sm:$0xff] }
  0xff   : > { %1873 = vxpose.xlu1.b32.end [16/16] (narrow) %v1872_v7, 32  ;;  %v1718_v7 = vpop.trf.xlu0 }
 0x100   : > { %1897 = vxpose.xlu0.b32.cont [2/16] (narrow) %v3575_v27, 32  ;;  %v1924_v27 = vpack.i.bf16 %v3246_v23, %v3586_v62 }
 0x103   : > { %1947 = vxpose.xlu1.b32.start [1/16] (narrow) %v1946_v15, 32  ;;  %v1723_v29 = vpop.trf.xlu0  ;;  %v987_v15 = vrot.slane %v376_v48, 2 }
 0x104   : > { %1899 = vxpose.xlu0.b32.cont [3/16] (narrow) %v3576_v56, 32 }
 0x107   : > { %1949 = vxpose.xlu1.b32.cont [2/16] (narrow) %v1948_v3, 32  ;;  %v1728_v3 = vpop.trf.xlu0 }
 0x108   : > { %1901 = vxpose.xlu0.b32.cont [4/16] (narrow) %v3577_v14, 32  ;;  %v1770_v14 = vpop.trf.xlu1 }
 0x109   : > { %v1771_v48 = vunpack.i.l.bf16 %v1770_v14 }
 0x10b   : > { %1951 = vxpose.xlu1.b32.cont [3/16] (narrow) %v3176_v10, 32  ;;  %v1733_v22 = vpop.trf.xlu0 }
 0x10c   : > { %1903 = vxpose.xlu0.b32.cont [5/16] (narrow) %v3578_v34, 32  ;;  %v1727_v34 = vunpack.i.h.bf16 %v1723_v29 }
 0x10f   : > { %1953 = vxpose.xlu1.b32.cont [4/16] (narrow) %v3182_v55, 32 }
 0x110   : > { %1905 = vxpose.xlu0.b32.cont [6/16] (narrow) %v3579_v60, 32  ;;  %v1722_v60 = vunpack.i.h.bf16 %v1718_v7 }
 0x113   : > { %1955 = vxpose.xlu1.b32.cont [5/16] (narrow) %v3188_v63, 32 }
 0x114   : > { %1907 = vxpose.xlu0.b32.cont [7/16] (narrow) %v3580_v59, 32  ;;  %v1724_v59 = vunpack.i.l.bf16 %v1723_v29 }
 0x117   : > { %1957 = vxpose.xlu1.b32.cont [6/16] (narrow) %v3194_v37, 32 }
 0x118   : > { %1909 = vxpose.xlu0.b32.cont [8/16] (narrow) %v3581_v40, 32  ;;  %v1719_v40 = vunpack.i.l.bf16 %v1718_v7  ;;  %v1734_v7 = vunpack.i.l.bf16 %v1733_v22 }
 0x11b   : > { %1959 = vxpose.xlu1.b32.cont [7/16] (narrow) %v3200_v17, 32 }
 0x11c   : > { %1911 = vxpose.xlu0.b32.cont [9/16] (narrow) %v3582_v18, 32  ;;  %v988_v18 = vsel %vm669_vm3, %v985_v35, %v987_v15  ;;  %v3590_v15 = vld [vmem:[#allocation20_spill] sm:$0xff] }
 0x11f   : > { %1961 = vxpose.xlu1.b32.cont [8/16] (narrow) %v3206_v58, 32 }
 0x120   : > { %1913 = vxpose.xlu0.b32.cont [10/16] (narrow) %v3583_v43, 32  ;;  %v1265_v43 = vpack.c.bf16 %v1727_v34, %v1722_v60 }
 0x122   : > { %1368 = vmatprep.subr.bf16.mxu1 %v1265_v43 }
 0x123   : > { %1963 = vxpose.xlu1.b32.cont [9/16] (narrow) %v3212_v47, 32 }
 0x124   : > { %1915 = vxpose.xlu0.b32.cont [11/16] (narrow) %v3584_v39, 32  ;;  %v1264_v39 = vpack.c.bf16 %v1724_v59, %v1719_v40  ;;  %v3592_v40 = vld [vmem:[#allocation23_spill] sm:$0xff] }
 0x126   : > { %1369 = vmatpush1.bf16.msra.mxu1 %v1264_v39 }
 0x127   : > { %1965 = vxpose.xlu1.b32.cont [10/16] (narrow) %v3218_v19, 32 }
 0x128   : > { %1917 = vxpose.xlu0.b32.cont [12/16] (narrow) %v2958_v16, 32  ;;  %v3235_v16 = vsel %vm492_vm2, %v913_v25, %v914_v24  ;;  %v3587_v25 = vpack.i.bf16 %v2625_v50, %v2627_v51  ;;  %v1774_v24 = vunpack.i.h.bf16 %v1770_v14  ;;  %v3588_v50 = vpack.i.bf16 %v2667_v8, %v2669_v9  ;;  %v3591_v9 = vld [vmem:[#allocation24_spill] sm:$0xff] }
 0x129   : > { %v1922_v1 = vpack.i.bf16 %v3235_v16, %v3585_v32  ;;  %v2002_v51 = vpack.i.bf16 %v2692_v20, %v2694_v21  ;;  %v2004_v8 = vpack.i.bf16 %v2712_v30, %v2714_v31  ;;  %v2052_v20 = vpack.i.bf16 %v3592_v40, %v3591_v9  ;;  %v3593_v30 = vld [vmem:[#allocation27_spill] sm:$0xff]  ;;  %v3594_v31 = vld [vmem:[#allocation26_spill] sm:$0xff] }
 0x12b   : > { %1967 = vxpose.xlu1.b32.cont [11/16] (narrow) %v3224_v42, 32 }
 0x12c   : > { %1919 = vxpose.xlu0.b32.cont [13/16] (narrow) %v2979_v13, 32  ;;  %v984_v13 = vrot.slane %v3157_v36, 2 }
 0x12e   : > { %v986_v52 = vsel %vm669_vm3, %v984_v13, %v985_v35  ;;  %v1737_v13 = vunpack.i.h.bf16 %v1733_v22 }
 0x12f   : > { %1969 = vxpose.xlu1.b32.cont [12/16] (narrow) %v3232_v41, 32  ;;  %v3257_v56 = vpack.i.bf16 %v2953_v33, %v986_v52  ;;  %v3266_v33 = vpack.i.bf16 %v2973_v6, %v988_v18  ;;  %v3589_v6 = vld [vmem:[#allocation21_spill] sm:$0xff] }
 0x130   : > { %1921 = vxpose.xlu0.b32.cont [14/16] (narrow) %v2997_v38, 32  ;;  %v3253_v38 = vpack.i.bf16 %v3149_v0, %v3152_v12  ;;  %v1732_v0 = vunpack.i.h.bf16 %v1728_v3  ;;  %v1729_v12 = vunpack.i.l.bf16 %v1728_v3  ;;  %v2050_v3 = vpack.i.bf16 %v3590_v15, %v3589_v6  ;;  %v3596_v15 = vld [vmem:[#allocation29_spill] sm:$0xff] }
 0x132   : > { %v1267_v52 = vpack.c.bf16 %v1737_v13, %v1732_v0  ;;  %v1266_v29 = vpack.c.bf16 %v1734_v7, %v1729_v12  ;;  %v2054_v13 = vpack.i.bf16 %v3594_v31, %v3593_v30  ;;  %v3600_v30 = vld [vmem:[#allocation36_spill] sm:$0xff] }
 0x133   : > { %1971 = vxpose.xlu1.b32.cont [13/16] (narrow) %v3241_v44, 32 }
 0x134   : > { %1923 = vxpose.xlu0.b32.cont [15/16] (narrow) %v1922_v1, 32  ;;  %v1775_v1 = vpop.trf.xlu1  ;;  %1370 = vmatprep.subr.bf16.mxu1 %v1267_v52 }
 0x135   : > { %v1779_v35 = vunpack.i.h.bf16 %v1775_v1  ;;  %1371 = vmatpush1.bf16.msra.mxu1 %v1266_v29 }
 0x137   : > { %1973 = vxpose.xlu1.b32.cont [14/16] (narrow) %v3253_v38, 32  ;;  %v1269_v60 = vpack.c.bf16 %v1779_v35, %v1774_v24 }
 0x138   : > { %1925 = vxpose.xlu0.b32.end [16/16] (narrow) %v1924_v27, 32  ;;  %v1776_v27 = vunpack.i.l.bf16 %v1775_v1  ;;  %v1780_v34 = vpop.trf.xlu1 }
 0x139   : > { %1372 = vmatprep.subr.bf16.mxu1 %v1269_v60  ;;  %v1784_v21 = vunpack.i.h.bf16 %v1780_v34  ;;  %v1781_v18 = vunpack.i.l.bf16 %v1780_v34 }
 0x13a   : > { %v1268_v59 = vpack.c.bf16 %v1776_v27, %v1771_v48  ;;  %v2006_v48 = vpack.i.bf16 %v2741_v49, %v2743_v53  ;;  %v2008_v49 = vpack.i.bf16 %v2763_v61, %v2765_v2  ;;  %v3595_v53 = vld [vmem:[#allocation30_spill] sm:$0xff]  ;;  %v2010_v61 = vpack.i.bf16 %v2792_v45, %v2794_v46  ;;  %v3597_v2 = vld [vmem:[#allocation33_spill] sm:$0xff] }
 0x13b   : > { %1975 = vxpose.xlu1.b32.cont [15/16] (narrow) %v3257_v56, 32 }
 0x13c   : > { %1999 = vxpose.xlu0.b32.start [1/16] (narrow) %v3587_v25, 32  ;;  %v1822_v14 = vpop.trf.xlu0  ;;  %v1785_v12 = vpop.trf.xlu1  ;;  %1373 = vmatpush1.bf16.msra.mxu1 %v1268_v59 }
 0x13d   : > { %v1826_v43 = vunpack.i.h.bf16 %v1822_v14  ;;  %v1789_v25 = vunpack.i.h.bf16 %v1785_v12  ;;  %v1786_v24 = vunpack.i.l.bf16 %v1785_v12  ;;  %v1823_v22 = vunpack.i.l.bf16 %v1822_v14 }
 0x13f   : > { %1977 = vxpose.xlu1.b32.end [16/16] (narrow) %v3266_v33, 32  ;;  %v1271_v27 = vpack.c.bf16 %v1789_v25, %v1784_v21  ;;  %v1270_v52 = vpack.c.bf16 %v1786_v24, %v1781_v18 }
 0x140   : > { %2001 = vxpose.xlu0.b32.cont [2/16] (narrow) %v3588_v50, 32  ;;  %v1827_v0 = vpop.trf.xlu0 }
 0x141   : > { %v1831_v39 = vunpack.i.h.bf16 %v1827_v0  ;;  %v1828_v1 = vunpack.i.l.bf16 %v1827_v0  ;;  %1374 = vmatprep.subr.bf16.mxu1 %v1271_v27  ;;  %v3598_v0 = vld [vmem:[#allocation32_spill] sm:$0xff] }
 0x142   : > { %1375 = vmatpush1.bf16.msra.mxu1 %v1270_v52  ;;  %v2058_v12 = vpack.i.bf16 %v3598_v0, %v3597_v2  ;;  %v3601_v27 = vld [vmem:[#allocation40_spill] sm:$0xff]  ;;  %v3602_v52 = vld [vmem:[#allocation39_spill] sm:$0xff] }
 0x143   : > { %2051 = vxpose.xlu1.b32.start [1/16] (narrow) %v2050_v3, 32  ;;  %v1874_v35 = vpop.trf.xlu1  ;;  %v1273_v29 = vpack.c.bf16 %v1831_v39, %v1826_v43  ;;  %v1272_v6 = vpack.c.bf16 %v1828_v1, %v1823_v22  ;;  %v2056_v3 = vpack.i.bf16 %v3596_v15, %v3595_v53  ;;  %v2012_v22 = vpack.i.bf16 %v2816_v4, %v2818_v11  ;;  %v3599_v1 = vld [vmem:[#allocation37_spill] sm:$0xff]  ;;  %v3605_v4 = vld [vmem:[#allocation46_spill] sm:$0xff]  ;;  %v3608_v15 = vld [vmem:[#allocation48_spill] sm:$0xff] }
 0x144   : > { %2003 = vxpose.xlu0.b32.cont [3/16] (narrow) %v2002_v51, 32  ;;  %v1832_v7 = vpop.trf.xlu0  ;;  %v1878_v14 = vunpack.i.h.bf16 %v1874_v35  ;;  %v1875_v40 = vunpack.i.l.bf16 %v1874_v35  ;;  %v2060_v31 = vpack.i.bf16 %v3600_v30, %v3599_v1  ;;  %v3606_v11 = vld [vmem:[#allocation45_spill] sm:$0xff]  ;;  %v3615_v0 = vld [vmem:[#allocation63_spill] sm:$0xff]  ;;  %v3321_v30 = vld [vmem:[#allocation2 + $0x1a0] sm:$0xff] }
 0x145   : > { %v1836_v50 = vunpack.i.h.bf16 %v1832_v7  ;;  %v1833_v51 = vunpack.i.l.bf16 %v1832_v7  ;;  %1376 = vmatprep.subr.bf16.mxu1 %v1273_v29  ;;  %v2014_v29 = vpack.i.bf16 %v3602_v52, %v3601_v27  ;;  %v3607_v53 = vld [vmem:[#allocation49_spill] sm:$0xff] }
 0x146   : > { %1377 = vmatpush1.bf16.msra.mxu1 %v1272_v6 }
 0x147   : > { %2053 = vxpose.xlu1.b32.cont [2/16] (narrow) %v2052_v20, 32  ;;  %v1879_v60 = vpop.trf.xlu1 }
 0x148   : > { %2005 = vxpose.xlu0.b32.cont [4/16] (narrow) %v2004_v8, 32  ;;  %v1837_v34 = vpop.trf.xlu0  ;;  %v1883_v9 = vunpack.i.h.bf16 %v1879_v60  ;;  %v1880_v20 = vunpack.i.l.bf16 %v1879_v60  ;;  %v3610_v60 = vld [vmem:[#allocation54_spill] sm:$0xff] }
 0x149   : > { %v1841_v59 = vunpack.i.h.bf16 %v1837_v34  ;;  %v1838_v8 = vunpack.i.l.bf16 %v1837_v34  ;;  %v3609_v34 = vld [vmem:[#allocation55_spill] sm:$0xff] }
 0x14a   : > { %v1277_v39 = vpack.c.bf16 %v1883_v9, %v1878_v14  ;;  %v2018_v14 = vpack.i.bf16 %v2899_v26, %v2901_v57  ;;  %v3612_v9 = vld [vmem:[#allocation57_spill] sm:$0xff] }
 0x14b   : > { %2055 = vxpose.xlu1.b32.cont [3/16] (narrow) %v2054_v13, 32  ;;  %v1275_v21 = vpack.c.bf16 %v1841_v59, %v1836_v50  ;;  %v1274_v18 = vpack.c.bf16 %v1838_v8, %v1833_v51  ;;  %v1884_v43 = vpop.trf.xlu1  ;;  %v3603_v50 = vld [vmem:[#allocation43_spill] sm:$0xff]  ;;  %v3604_v51 = vld [vmem:[#allocation42_spill] sm:$0xff]  ;;  %v2066_v59 = vpack.i.bf16 %v3610_v60, %v3609_v34  ;;  %v2165_v57 = vld [vmem:[#allocation2 + $0xc8] sm:$0xff] }
 0x14c   : > { %2007 = vxpose.xlu0.b32.cont [5/16] (narrow) %v2006_v48, 32  ;;  %v1888_v25 = vunpack.i.h.bf16 %v1884_v43  ;;  %v1885_v24 = vunpack.i.l.bf16 %v1884_v43  ;;  %v1276_v48 = vpack.c.bf16 %v1880_v20, %v1875_v40  ;;  %v2062_v6 = vpack.i.bf16 %v3604_v51, %v3603_v50  ;;  %v3611_v8 = vld [vmem:[#allocation58_spill] sm:$0xff]  ;;  %v3613_v20 = vld [vmem:[#allocation61_spill] sm:$0xff] }
 0x14d   : > { %1378 = vmatprep.subr.bf16.mxu1 %v1275_v21  ;;  %v2020_v40 = vpack.i.bf16 %v3612_v9, %v3611_v8  ;;  %v3614_v21 = vld [vmem:[#allocation60_spill] sm:$0xff]  ;;  %v2024_v43 = vpack.i.bf16 %v2165_v57, %v3162_v5  ;;  %v1123_v5 = vrot.slane %v3321_v30, 1 }
 0x14e   : > { %1379 = vmatpush1.bf16.msra.mxu1 %v1274_v18  ;;  %v2068_v18 = vpack.i.bf16 %v3614_v21, %v3613_v20 }
 0x14f   : > { %2057 = vxpose.xlu1.b32.cont [4/16] (narrow) %v2056_v3, 32  ;;  %v1889_v45 = vpop.trf.xlu1  ;;  %1380 = vmatprep.subr.bf16.mxu1 %v1277_v39  ;;  %v2064_v3 = vpack.i.bf16 %v3608_v15, %v3607_v53  ;;  %v3617_v39 = vld [vmem:[#allocation65_spill] sm:$0xff] }
 0x150   : > { %2009 = vxpose.xlu0.b32.cont [6/16] (narrow) %v2008_v49, 32  ;;  %v1893_v46 = vunpack.i.h.bf16 %v1889_v45  ;;  %v1890_v13 = vunpack.i.l.bf16 %v1889_v45  ;;  %v2016_v49 = vpack.i.bf16 %v3606_v11, %v3605_v4  ;;  %v3327_v45 = vld [vmem:[#allocation2 + $0x1a8] sm:$0x3] }
 0x151   : > { %v1125_v27 = vrot.slane %v3327_v45, 1 }
 0x152   : > { %1381 = vmatpush1.bf16.msra.mxu1 %v1276_v48  ;;  %v1279_v7 = vpack.c.bf16 %v1893_v46, %v1888_v25  ;;  %v1278_v35 = vpack.c.bf16 %v1890_v13, %v1885_v24  ;;  %v3618_v25 = vld [vmem:[#allocation64_spill] sm:$0xff]  ;;  %v3318_v48 = vld [vmem:[#allocation2 + $0x198] sm:$0xff] }
 0x153   : > { %2059 = vxpose.xlu1.b32.cont [5/16] (narrow) %v2058_v12, 32  ;;  %v3616_v12 = vld [vmem:[#allocation62_spill] sm:$0xff]  ;;  %v2072_v24 = vpack.i.bf16 %v3618_v25, %v3617_v39  ;;  %v2167_v46 = vld [vmem:[#allocation2 + $0xe0] sm:$0xff]  ;;  %v1126_v52 = vsel %vm492_vm2, %v1123_v5, %v1125_v27 }
 0x154   : > { %2011 = vxpose.xlu0.b32.cont [7/16] (narrow) %v2010_v61, 32  ;;  %1382 = vmatprep.subr.bf16.mxu1 %v1279_v7  ;;  %v2164_v61 = vld [vmem:[#allocation2 + $0xc0] sm:$0xff]  ;;  %v2070_v26 = vpack.i.bf16 %v3616_v12, %v3615_v0  ;;  %v2028_v13 = vpack.i.bf16 %v2167_v46, %v3321_v30  ;;  %v2076_v7 = vpack.i.bf16 %v3586_v62, %v3246_v23 }
 0x155   : > { %v2022_v2 = vpack.i.bf16 %v2164_v61, %v3157_v36  ;;  %v2074_v36 = vpack.i.bf16 %v3585_v32, %v3235_v16  ;;  %v3619_v16 = vld [vmem:[#allocation16_spill] sm:$0xff] }
 0x156   : > { %1383 = vmatpush1.bf16.msra.mxu1 %v1278_v35  ;;  %v2158_v62 = vld [vmem:[#allocation6 + $0x4] ss:$12 sps:$4 sm:$0xff]  }
 0x157   : > { %2061 = vxpose.xlu1.b32.cont [6/16] (narrow) %v2060_v31, 32  ;;  %v1122_v31 = vrot.slane %v3318_v48, 1  ;;  %1400 = vmatprep.mubr.bf16.mxu1 %v2158_v62 }
 0x158   : > { %2013 = vxpose.xlu0.b32.cont [8/16] (narrow) %v2012_v22, 32  ;;  %v2166_v22 = vld [vmem:[#allocation2 + $0xd8] sm:$0xff] }
 0x159   : > { %v2026_v1 = vpack.i.bf16 %v2166_v22, %v3318_v48  ;;  %v1124_v35 = vsel %vm492_vm2, %v1122_v31, %v1123_v5  ;;  %v1196_v22 = vrot.slane %v3327_v45, 2 }
 0x15a   : > { %v2078_v32 = vpack.i.bf16 %v3619_v16, %v1124_v35 }
 0x15b   : > { %2063 = vxpose.xlu1.b32.cont [7/16] (narrow) %v2062_v6, 32 }
 0x15c   : > { %2015 = vxpose.xlu0.b32.cont [9/16] (narrow) %v2014_v29, 32  ;;  %v3620_v29 = vld [vmem:[#allocation18_spill] sm:$0xff] }
 0x15d   : > { %v2080_v50 = vpack.i.bf16 %v3620_v29, %v1126_v52 }
 0x15f   : > { %2065 = vxpose.xlu1.b32.cont [8/16] (narrow) %v2064_v3, 32 }
 0x160   : > { %2017 = vxpose.xlu0.b32.cont [10/16] (narrow) %v2016_v49, 32 }
 0x163   : > { %2067 = vxpose.xlu1.b32.cont [9/16] (narrow) %v2066_v59, 32 }
 0x164   : > { %2019 = vxpose.xlu0.b32.cont [11/16] (narrow) %v2018_v14, 32 }
 0x167   : > { %2069 = vxpose.xlu1.b32.cont [10/16] (narrow) %v2068_v18, 32 }
 0x168   : > { %2021 = vxpose.xlu0.b32.cont [12/16] (narrow) %v2020_v40, 32 }
 0x16b   : > { %2071 = vxpose.xlu1.b32.cont [11/16] (narrow) %v2070_v26, 32 }
 0x16c   : > { %2023 = vxpose.xlu0.b32.cont [13/16] (narrow) %v2022_v2, 32 }
 0x16f   : > { %2073 = vxpose.xlu1.b32.cont [12/16] (narrow) %v2072_v24, 32 }
 0x170   : > { %2025 = vxpose.xlu0.b32.cont [14/16] (narrow) %v2024_v43, 32 }
 0x173   : > { %2075 = vxpose.xlu1.b32.cont [13/16] (narrow) %v2074_v36, 32 }
 0x174   : > { %2027 = vxpose.xlu0.b32.cont [15/16] (narrow) %v2026_v1, 32 }
 0x177   : > { %2077 = vxpose.xlu1.b32.cont [14/16] (narrow) %v2076_v7, 32 }
 0x178   : > { %2029 = vxpose.xlu0.b32.end [16/16] (narrow) %v2028_v13, 32 }
 0x17b   : > { %2079 = vxpose.xlu1.b32.cont [15/16] (narrow) %v2078_v32, 32 }
 0x17c   : > { %2103 = vxpose.xlu0.b32.start [1/16] (narrow) %v3176_v10, 32  ;;  %v1926_v51 = vpop.trf.xlu0 }
 0x17d   : > { %v1930_v6 = vunpack.i.h.bf16 %v1926_v51  ;;  %v1927_v4 = vunpack.i.l.bf16 %v1926_v51 }
 0x17f   : > { %2081 = vxpose.xlu1.b32.end [16/16] (narrow) %v2080_v50, 32 }
 0x180   : > { %2105 = vxpose.xlu0.b32.cont [2/16] (narrow) %v3182_v55, 32  ;;  %v1931_v23 = vpop.trf.xlu0 }
 0x181   : > { %v1935_v11 = vunpack.i.h.bf16 %v1931_v23  ;;  %v1932_v49 = vunpack.i.l.bf16 %v1931_v23 }
 0x183   : > { %v1281_v53 = vpack.c.bf16 %v1935_v11, %v1930_v6  ;;  %v1280_v15 = vpack.c.bf16 %v1932_v49, %v1927_v4  ;;  %v1978_v10 = vpop.trf.xlu1 }
 0x184   : > { %2107 = vxpose.xlu0.b32.cont [3/16] (narrow) %v3188_v63, 32  ;;  %v1936_v3 = vpop.trf.xlu0  ;;  %v1982_v60 = vunpack.i.h.bf16 %v1978_v10  ;;  %v1979_v55 = vunpack.i.l.bf16 %v1978_v10 }
 0x185   : > { %1384 = vmatprep.subr.bf16.mxu1 %v1281_v53  ;;  %v1940_v14 = vunpack.i.h.bf16 %v1936_v3  ;;  %v1937_v34 = vunpack.i.l.bf16 %v1936_v3 }
 0x186   : > { %1385 = vmatpush1.bf16.msra.mxu1 %v1280_v15 }
 0x187   : > { %v1983_v8 = vpop.trf.xlu1 }
 0x188   : > { %2109 = vxpose.xlu0.b32.cont [4/16] (narrow) %v3194_v37, 32  ;;  %v1941_v59 = vpop.trf.xlu0  ;;  %v1987_v20 = vunpack.i.h.bf16 %v1983_v8  ;;  %v1984_v21 = vunpack.i.l.bf16 %v1983_v8  ;;  %v2305_v37 = vmov 0  }
 0x189   : > { %v1945_v9 = vunpack.i.h.bf16 %v1941_v59  ;;  %v1942_v40 = vunpack.i.l.bf16 %v1941_v59  ;;  %1453 = vmatprep.mubr.bf16.mxu0 %v2305_v37  ;;  %v2161_v59 = vld [vmem:[#allocation6 + $0x18] ss:$12 sps:$4 sm:$0xff]  }
 0x18a   : > { %v1285_v2 = vpack.c.bf16 %v1984_v21, %v1979_v55  ;;  %v1284_v0 = vpack.c.bf16 %v1987_v20, %v1982_v60  ;;  %v2156_v60 = vld [vmem:[#allocation6] ss:$12 sps:$4 sm:$0xff]   ;;  %v2159_v55 = vld [vmem:[#allocation6 + $0x1c] ss:$12 sps:$4 sm:$0xff]  }
 0x18b   : > { %v1283_v18 = vpack.c.bf16 %v1945_v9, %v1940_v14  ;;  %v1282_v61 = vpack.c.bf16 %v1942_v40, %v1937_v34  ;;  %v1988_v63 = vpop.trf.xlu1 }
 0x18c   : > { %2111 = vxpose.xlu0.b32.cont [5/16] (narrow) %v3200_v17, 32  ;;  %v1992_v12 = vunpack.i.h.bf16 %v1988_v63  ;;  %v1989_v26 = vunpack.i.l.bf16 %v1988_v63  ;;  %v1308_v17 = vld [vmem:[%s3429_s2] sm:$0xff] }
 0x18d   : > { %1386 = vmatprep.subr.bf16.mxu1 %v1283_v18 }
 0x18e   : > { %1387 = vmatpush1.bf16.msra.mxu1 %v1282_v61 }
 0x18f   : > { %1388 = vmatprep.subr.bf16.mxu1 %v1285_v2  ;;  %v1993_v57 = vpop.trf.xlu1 }
 0x190   : > { %2113 = vxpose.xlu0.b32.cont [6/16] (narrow) %v3206_v58, 32  ;;  %v1997_v43 = vunpack.i.h.bf16 %v1993_v57  ;;  %v1994_v39 = vunpack.i.l.bf16 %v1993_v57  ;;  %v1309_v58 = vld [vmem:[%s3429_s2 + $0x8] sm:$0xff] }
 0x192   : > { %1389 = vmatpush1.bf16.msra.mxu1 %v1284_v0  ;;  %v1287_v25 = vpack.c.bf16 %v1994_v39, %v1989_v26  ;;  %v1286_v24 = vpack.c.bf16 %v1997_v43, %v1992_v12 }
 0x194   : > { %2115 = vxpose.xlu0.b32.cont [7/16] (narrow) %v3212_v47, 32  ;;  %1390 = vmatprep.subr.bf16.mxu1 %v1287_v25  ;;  %v1310_v47 = vld [vmem:[%s3429_s2 + $0x10] sm:$0xff] }
 0x196   : > { %1391 = vmatpush1.bf16.msra.mxu1 %v1286_v24  ;;  %v2162_v24 = vld [vmem:[#allocation6 + $0x8] ss:$12 sps:$4 sm:$0xff]  }
 0x198   : > { %2117 = vxpose.xlu0.b32.cont [8/16] (narrow) %v3218_v19, 32  ;;  %v1311_v19 = vld [vmem:[%s3429_s2 + $0x18] sm:$0xff] }
 0x19c   : > { %2119 = vxpose.xlu0.b32.cont [9/16] (narrow) %v3224_v42, 32  ;;  %v1193_v42 = vrot.slane %v3318_v48, 2 }
 0x19d   : > { %2154 = vset.pattern.permute.xlu1 %v2305_v37 }
 0x19e   : > { %1314 = vperm.xlu1 %2154, %v1308_v17   ;;  %v2163_v17 = vld [vmem:[#allocation6 + $0x20] ss:$12 sps:$4 sm:$0xff]  }
 0x1a0   : > { %2121 = vxpose.xlu0.b32.cont [10/16] (narrow) %v3232_v41, 32  ;;  %v1194_v41 = vrot.slane %v3321_v30, 2 }
 0x1a2   : > { %1319 = vperm.xlu1 %2154, %v1309_v58  }
 0x1a4   : > { %2123 = vxpose.xlu0.b32.cont [11/16] (narrow) %v3241_v44, 32  ;;  %v1195_v44 = vsel %vm669_vm3, %v1193_v42, %v1194_v41 }
 0x1a5   : > { %v2130_v1 = vpack.i.bf16 %v3005_v28, %v1195_v44 }
 0x1a6   : > { %1324 = vperm.xlu1 %2154, %v1310_v47  }
 0x1a8   : > { %2125 = vxpose.xlu0.b32.cont [12/16] (narrow) %v3253_v38, 32  ;;  %v1197_v38 = vsel %vm669_vm3, %v1194_v41, %v1196_v22 }
 0x1a9   : > { %v2132_v36 = vpack.i.bf16 %v3013_v54, %v1197_v38 }
 0x1aa   : > { %1329 = vperm.xlu1 %2154, %v1311_v19  }
 0x1ac   : > { %2127 = vxpose.xlu0.b32.cont [13/16] (narrow) %v3257_v56, 32 }
 0x1b0   : > { %2129 = vxpose.xlu0.b32.cont [14/16] (narrow) %v3266_v33, 32 }
 0x1b4   : > { %2131 = vxpose.xlu0.b32.cont [15/16] (narrow) %v2130_v1, 32 }
 0x1b8   : > { %2133 = vxpose.xlu0.b32.end [16/16] (narrow) %v2132_v36, 32 }
 0x1bc   : > { %v2030_v48 = vpop.trf.xlu0 }
 0x1bd   : > { %v2034_v31 = vunpack.i.h.bf16 %v2030_v48  ;;  %v2031_v30 = vunpack.i.l.bf16 %v2030_v48 }
 0x1c0   : > { %v2035_v5 = vpop.trf.xlu0 }
 0x1c1   : > { %v2039_v46 = vunpack.i.h.bf16 %v2035_v5  ;;  %v2036_v56 = vunpack.i.l.bf16 %v2035_v5 }
 0x1c3   : > { %v1289_v13 = vpack.c.bf16 %v2036_v56, %v2031_v30  ;;  %v1288_v7 = vpack.c.bf16 %v2039_v46, %v2034_v31  ;;  %v2082_v45 = vpop.trf.xlu1 }
 0x1c4   : > { %v2040_v35 = vpop.trf.xlu0  ;;  %v2086_v27 = vunpack.i.h.bf16 %v2082_v45  ;;  %v2083_v16 = vunpack.i.l.bf16 %v2082_v45 }
 0x1c5   : > { %1392 = vmatprep.subr.bf16.mxu1 %v1289_v13  ;;  %v2044_v33 = vunpack.i.h.bf16 %v2040_v35  ;;  %v2041_v28 = vunpack.i.l.bf16 %v2040_v35 }
 0x1c6   : > { %1393 = vmatpush1.bf16.msra.mxu1 %v1288_v7 }
 0x1c7   : > { %v2087_v52 = vpop.trf.xlu1 }
 0x1c8   : > { %v2045_v32 = vpop.trf.xlu0  ;;  %v2091_v50 = vunpack.i.h.bf16 %v2087_v52  ;;  %v2088_v51 = vunpack.i.l.bf16 %v2087_v52 }
 0x1c9   : > { %v2049_v54 = vunpack.i.h.bf16 %v2045_v32  ;;  %v2046_v29 = vunpack.i.l.bf16 %v2045_v32 }
 0x1ca   : > { %v1293_v62 = vpack.c.bf16 %v2088_v51, %v2083_v16  ;;  %v1292_v11 = vpack.c.bf16 %v2091_v50, %v2086_v27 }
 0x1cb   : > { %v1291_v6 = vpack.c.bf16 %v2046_v29, %v2041_v28  ;;  %v1290_v4 = vpack.c.bf16 %v2049_v54, %v2044_v33  ;;  %v2092_v23 = vpop.trf.xlu1 }
 0x1cc   : > { %v2096_v49 = vunpack.i.h.bf16 %v2092_v23  ;;  %v2093_v53 = vunpack.i.l.bf16 %v2092_v23 }
 0x1cd   : > { %1394 = vmatprep.subr.bf16.mxu1 %v1291_v6 }
 0x1ce   : > { %1395 = vmatpush1.bf16.msra.mxu1 %v1290_v4 }
 0x1cf   : > { %1396 = vmatprep.subr.bf16.mxu1 %v1293_v62  ;;  %v2097_v15 = vpop.trf.xlu1 }
 0x1d0   : > { %v2101_v3 = vunpack.i.h.bf16 %v2097_v15  ;;  %v2098_v10 = vunpack.i.l.bf16 %v2097_v15 }
 0x1d2   : > { %1397 = vmatpush1.bf16.msra.mxu1 %v1292_v11  ;;  %v1295_v14 = vpack.c.bf16 %v2098_v10, %v2093_v53  ;;  %v1294_v34 = vpack.c.bf16 %v2101_v3, %v2096_v49 }
 0x1d4   : > { %1398 = vmatprep.subr.bf16.mxu1 %v1295_v14 }
 0x1d6   : > { %1399 = vmatpush1.bf16.msra.mxu1 %v1294_v34 }
 0x1d9   : > { %1401 = vmatmul.mubr.bf16.vlgmr.msra.gmra.mrb[0].mxu1 %v2156_v60 }
 0x1da   : > { %1410 = vmatprep.mubr.bf16.mxu1 %v2159_v55 }
 0x1e1   : > { %1411 = vmatmul.mubr.bf16.gmra.mrb[4].mxu1 %v2161_v59  ;;  %2155 = vset.pattern.permute.xlu0 %v2305_v37 }
 0x1fc   : > { %v2134_v8 = vpop.trf.xlu0 }
 0x1fd   : > { %v2135_v40 = vunpack.i.l.bf16 %v2134_v8  ;;  %v2138_v20 = vunpack.i.h.bf16 %v2134_v8 }
 0x200   : > { %v2139_v9 = vpop.trf.xlu0 }
 0x201   : > { %v2140_v21 = vunpack.i.l.bf16 %v2139_v9  ;;  %v2143_v18 = vunpack.i.h.bf16 %v2139_v9 }
 0x203   : > { %v1297_v61 = vpack.c.bf16 %v2140_v21, %v2135_v40  ;;  %v1296_v63 = vpack.c.bf16 %v2143_v18, %v2138_v20 }
 0x204   : > { %v2144_v2 = vpop.trf.xlu0 }
 0x205   : > { %1421 = vmatprep.subr.bf16.mxu0 %v1297_v61  ;;  %v2148_v0 = vunpack.i.h.bf16 %v2144_v2  ;;  %v2145_v12 = vunpack.i.l.bf16 %v2144_v2 }
 0x206   : > { %1422 = vmatpush1.bf16.msra.mxu0 %v1296_v63 }
 0x208   : > { %v2149_v26 = vpop.trf.xlu0 }
 0x209   : > { %v2153_v57 = vunpack.i.h.bf16 %v2149_v26  ;;  %v2150_v43 = vunpack.i.l.bf16 %v2149_v26 }
 0x20b   : > { %v1299_v39 = vpack.c.bf16 %v2150_v43, %v2145_v12  ;;  %v1298_v25 = vpack.c.bf16 %v2153_v57, %v2148_v0 }
 0x20d   : > { %1423 = vmatprep.subr.bf16.mxu0 %v1299_v39 }
 0x20e   : > { %1424 = vmatpush1.bf16.msra.mxu0 %v1298_v25 }
 0x211   : > { %1596 = vmatmul.mubr.msk.bf16.vlgmr.msra.gmra.mrb[0].mxu0 %vm205_vm0, %v2162_v24 }
 0x212   : > { %1463 = vmatprep.mubr.bf16.mxu0 %v2305_v37 }
 0x219   : > { %1597 = vmatmul.mubr.msk.bf16.gmra.mrb[4].mxu0 %vm205_vm0, %v2163_v17 }
 0x21d   : > { %v1315_v38 = vpop.permute.xlu1 %1314 }
 0x221   : > { %v1320_v36 = vpop.permute.xlu1 %1319 }
 0x225   : > { %v1325_v30 = vpop.permute.xlu1 %1324 }
 0x229   : > { %v1330_v27 = vpop.permute.xlu1 %1329 }
 0x2ac   : > { %v1402_v58 = vpop.f32.mrb[0].mxu1 }
 0x2ad   : > { %v1404_v47 = vpop.f32.mrb[1].mxu1  ;;  %v1403_v48 = vadd.f32 %v1402_v58, %v1315_v38 }
 0x2ae   : > { %v1406_v19 = vpop.f32.mrb[2].mxu1  ;;  %v1405_v31 = vadd.f32 %v1404_v47, %v1315_v38 }
 0x2af   : > { %v1408_v42 = vpop.f32.mrb[3].mxu1  ;;  %v1407_v46 = vadd.f32 %v1406_v19, %v1320_v36 }
 0x2b0   : > { %v1409_v13 = vadd.f32 %v1408_v42, %v1320_v36 }
 0x2b4   : > { %v1412_v41 = vpop.f32.mrb[4].mxu1 }
 0x2b5   : > { %v1414_v44 = vpop.f32.mrb[5].mxu1  ;;  %v1413_v16 = vadd.f32 %v1412_v41, %v1325_v30 }
 0x2b6   : > { %v1416_v22 = vpop.f32.mrb[6].mxu1  ;;  %v1415_v32 = vadd.f32 %v1414_v44, %v1325_v30 }
 0x2b7   : > { %v1418_v1 = vpop.f32.mrb[7].mxu1  ;;  %v1417_v54 = vadd.f32 %v1416_v22, %v1330_v27 }
 0x2b8   : > { %v1419_v51 = vadd.f32 %v1418_v1, %v1330_v27 }
 0x2e4   : > { %v1455_v5 = vpop.f32.mrb[0].mxu0 }
 0x2e5   : > { %v1456_v37 = vadd.f32 %v1455_v5, %v1403_v48  ;;  %v1457_v56 = vpop.f32.mrb[1].mxu0 }
 0x2e6   : > { %v1458_v7 = vadd.f32 %v1457_v56, %v1405_v31  ;;  %v1459_v35 = vpop.f32.mrb[2].mxu0 }
 0x2e7   : > { %1474 = vst [vmem:[%s203_s28] sm:$0xff] %v1456_v37  ;;  %v1460_v45 = vadd.f32 %v1459_v35, %v1407_v46  ;;  %v1461_v33 = vpop.f32.mrb[3].mxu0 }
 0x2e8   : > { %1475 = vst [vmem:[%s203_s28 + $0x8] sm:$0xff] %v1458_v7  ;;  %v1462_v28 = vadd.f32 %v1461_v33, %v1409_v13 }
 0x2e9   : > { %1476 = vst [vmem:[%s203_s28 + $0x10] sm:$0xff] %v1460_v45 }
 0x2ea   : > { %1477 = vst [vmem:[%s203_s28 + $0x18] sm:$0xff] %v1462_v28 }
 0x2ec   : > { %v1465_v52 = vpop.f32.mrb[4].mxu0 }
 0x2ed   : > { %v1466_v29 = vadd.f32 %v1465_v52, %v1413_v16  ;;  %v1467_v50 = vpop.f32.mrb[5].mxu0 }
 0x2ee   : > { %v1468_v6 = vadd.f32 %v1467_v50, %v1415_v32  ;;  %v1469_v4 = vpop.f32.mrb[6].mxu0 }
 0x2ef   : > { %1478 = vst [vmem:[%s203_s28 + $0x20] sm:$0xff] %v1466_v29  ;;  %v1470_v23 = vadd.f32 %v1469_v4, %v1417_v54  ;;  %v1471_v62 = vpop.f32.mrb[7].mxu0 }
 0x2f0   : > { %1479 = vst [vmem:[%s203_s28 + $0x28] sm:$0xff] %v1468_v6  ;;  %v1472_v11 = vadd.f32 %v1471_v62, %v1419_v51 }
 0x2f1   : > { %1480 = vst [vmem:[%s203_s28 + $0x30] sm:$0xff] %v1470_v23 }
 0x2f2   : > { %1481 = vst [vmem:[%s203_s28 + $0x38] sm:$0xff] %v1472_v11 }
 0x2f3   : > { %2239 = shalt.err (!%p2236_p7)
}
 0x2f4   : > { %s2240_s4 = scalar_lea.hbm %s3383_s16, 1024  ;;  %s2244_s5 = scalar_lea.hbm %s3430_s3, 2048 }
 0x2f5   : > { %p2241_p9 = scmp.ne.s32.totalorder %s3383_s16, %s2240_s4  ;;  %p2245_p5 = scmp.lt.u32.totalorder %s3383_s16, %s3430_s3 }
 0x2f6   : > { %p2246_p11 = scmp.lt.u32.totalorder %s2244_s5, %s2240_s4  ;;  %p2248_p4 = scmp.lt.u32.totalorder %s2240_s4, %s3383_s16 }
 0x2f7   : > { %p2242_p2 = pnand %p2241_p9, %p2420_p12 }
 0x2f8   : > { %p2247_p1 = por %p2246_p11, %p2245_p5 }
 0x2f9   : > { %p2243_p0 = pneg %p2242_p2 }
 0x2fa   : > { %p2249_p6 = por %p2248_p4, %p2247_p1 }
 0x2fc   : > { %p2250_p8 = pnand %p2249_p6, %p2243_p0 }
 0x2fe   : > { %2253 = shalt.err (!%p2250_p8)
}
 0x2ff   : > { %s2307_s27 = smov 256   ;;  %s2308_s28 = smov 16  }
 0x300   : > { %1627 = dma.vmem_to_hbm [thread:$0]  (%p2420_p12), %s3378_s29, 1024, %s3383_s16, %s1483_s7, %s2307_s27, %s2307_s27, %s2308_s28  }
 0x301 PF: > { %s1511_s23 = sand.u32 1, %s2284_s12   ;;  %p3621_p10 = scmp.ne.s32.totalorder %s3496_s19, 0 }
 0x302   : > { %p3622_p13 = scmp.ge.s32.totalorder %s2296_s15, 2  ;;  %s1512_s30 = scalar_lea.sflag [#allocation5], %s1511_s23 }
 0x304   : > { %p1638_p3 = pnand %p3622_p13, %p3621_p10 }
 0x306   : > { %2279 = dma.done.wait (!%p1638_p3), %s1512_s30, 1024  }
 0x307   : > { %2281 = vsyncadd (!%p1638_p3), %s1512_s30, 4294966272  ;;  %p17_p7 = scmp.ge.s32.totalorder %s2385_s24, 4   ;;  %s3623_s12 = smov %s2288_s13 }
 0x308   : > { %s3624_s13 = smov %s2292_s14  ;;  %s3625_s14 = smov %s2416_s17 }
 0x309   : > { %s3626_s15 = smov %s2385_s24  ;;  %19 = sbr.rel (!%p17_p7) target bundleno = 6 (0x6), region = 82 }
 0x310   :  { %1517 = vsyncpa [#allocation4], 1 }
 0x311   :  { %1519 = vsyncpa [#allocation4 + $0x1], 1 }
 0x312   :  { %1520 = vsyncpa [#allocation7], 1 }
 0x313   :  { %1521 = vsyncpa [#allocation5], 1 }
 0x314   :  { %1523 = vsyncpa [#allocation5 + $0x1], 1 }

</bundles_post_ra>
